<compile_context>
chip_gen: v7x
topology: tpu7x:2x2x1
jax: 0.10.0
libtpu: 0.0.40
codegen_flags: <defaults>
</compile_context>

<pallas_src>
import functools

import jax
import jax.numpy as jnp
from jax import lax
from jax.experimental import pallas as pl
from jax.experimental.pallas import tpu as pltpu

NEG_SLOPE = 0.01  # PyTorch LeakyReLU default


def _ceil_to(v, m):
    return ((v + m - 1) // m) * m


def _padc(arr, axis, new):
    pad = [(0, 0)] * arr.ndim
    pad[axis] = (0, new - arr.shape[axis])
    return jnp.pad(arr, pad)


def _pick_ht(h):
    # Largest "nice" H tile <= 16 that divides H, preferring >= 2 tiles per
    # image so v7x's two TensorCores both get work.
    for cand in (16, 8, 4, 2):
        if cand < h and h % cand == 0:
            return cand
    return h


def _context_block_kernel(x_ref, bns_ref, bnb_ref, w1_ref, b1_ref, w2_ref,
                          b2_ref, o_ref, *, wp, ht, h_img, w_img, mxu_dtype):
    """One (image, H-tile) per grid step.  Flat spatial layout, row stride wp.

    x_ref : (Cip, TE)       zero-padded tile plane (4-row halo, 2 pad cols,
                            4-lane slack each side), flattened, f32
    bns/bnb: (Cip, 1)       fused BatchNorm scale / bias (f32)
    w1_ref: (25, Cop, Cip)  layer1 5x5 weights, one (out, in) matrix per tap
    w2_ref: (9, Cop, Cop)   layer2 3x3(dil=2) weights with attention folded in
    b1/b2 : (Cop, 1)
    o_ref : (Cop, L)        L = Ht*wp (valid rows; junk pad cols cropped later)
    """
    cop, L = o_ref.shape
    hbuf = ht + 8                      # tile rows incl. 4-row halo each side
    S = 4                              # lane slack each side of the flat buffer
    PA = L + 4 * wp + 4                # layer1 positions needed by layer2 taps
    TE = x_ref.shape[-1]               # == S + hbuf*wp + S

    r0 = pl.program_id(1) * ht         # first output image row of this tile

    # ---- interior mask, built in-kernel (iota + compares; no div/mod) -------
    # Buffer row rv holds image row r0+rv-4; buffer cols 2..W+1 hold image cols.
    col = lax.broadcasted_iota(jnp.int32, (1, wp), 1)
    col_row = jnp.where((col >= 2) & (col < w_img + 2), 1.0, 0.0).astype(jnp.float32)
    zslack = jnp.zeros((1, S), jnp.float32)
    colmask = jnp.concatenate([zslack] + [col_row] * hbuf + [zslack], axis=1)  # (1,TE)
    u = lax.broadcasted_iota(jnp.int32, (1, TE), 1)
    rlo = jnp.maximum(0, 4 - r0)                   # first valid buffer row
    rhi = jnp.minimum(hbuf, h_img + 4 - r0)        # one-past-last valid row
    rowmask = ((u >= S + rlo * wp) & (u < S + rhi * wp)).astype(jnp.float32)
    mask = colmask * rowmask                       # 1.0 exactly on image pixels

    # ---- BatchNorm2d (inference affine); bias gated by the mask so the conv's
    #      implicit zero padding stays exactly zero ---------------------------
    xn = x_ref[...] * bns_ref[...] + bnb_ref[...] * mask           # (Cip, TE) f32
    xn_m = xn.astype(mxu_dtype)

    # ---- layer1: 5x5 conv (pad=2) as 25 per-tap matmuls, one f32 accumulator
    acc1 = jnp.zeros((cop, PA), jnp.float32)
    for kh in range(5):
        for kw in range(5):
            off = kh * wp + kw
            acc1 = acc1 + jnp.dot(w1_ref[kh * 5 + kw], xn_m[:, off:off + PA],
                                  preferred_element_type=jnp.float32)
    a = acc1 + b1_ref[...]
    a = jnp.where(a > 0, a, NEG_SLOPE * a)                         # LeakyReLU
    # Re-zero pad/halo positions: `a` becomes its own zero-padded plane.
    a = a * mask[:, S + 2 * wp - 2: S + 2 * wp - 2 + PA]
    a_m = a.astype(mxu_dtype)

    # ---- layer2 (3x3, dil=2, pad=2) + attention 1x1, 9 per-tap matmuls ------
    # (the attention's `a` branch lives in the center tap of w2_ref, see wrapper)
    acc2 = jnp.zeros((cop, L), jnp.float32)
    for kh in range(3):
        for kw in range(3):
            off = 2 * (kh * wp + kw)
            acc2 = acc2 + jnp.dot(w2_ref[kh * 3 + kw], a_m[:, off:off + L],
                                  preferred_element_type=jnp.float32)
    o_ref[...] = (acc2 + b2_ref[...]).astype(o_ref.dtype)          # lane-dense store


def context_block(x_nchw, params, *, ht=None, mxu_dtype=jnp.bfloat16):
    """Fused ContextBlock forward.  x: (N, Cin, H, W) -> (N, Cout, H, W)."""
    bn_scale, bn_bias, w1, b1, w2, b2, watt = params
    x = x_nchw.astype(jnp.float32)
    N, Cin, H, W = x.shape
    Cout = w1.shape[-1]

    Cip = max(8, _ceil_to(Cin, 8))      # sublane-aligned channel counts
    Cop = max(8, _ceil_to(Cout, 8))
    if ht is None:
        ht = _pick_ht(H)
    assert H % ht == 0, (H, ht)
    n_ht = H // ht
    hbuf = ht + 8                       # 4-row halo each side
    wp = W + 4                          # padded row stride (2 cols each side)
    if wp > 128:                        # production widths: lane-align the rows
        wp = _ceil_to(wp, 128)
    S = 4                               # lane slack each side of the flat buffer
    TE = hbuf * wp + 2 * S              # per-tile flat input extent
    L = ht * wp                         # per-tile output positions
    PA = L + 4 * wp + 4

    # ---- fold the attention 1x1 conv into layer2 (exact: no activation between)
    wa = watt[:Cout, :]                 # `a` branch of the 1x1 conv
    wb = watt[Cout:, :]                 # `b` branch
    w2f = jnp.einsum('hwic,co->ohwi', w2, wb)          # (Cout, 3, 3, Cout)
    w2f = w2f.at[:, 1, 1, :].add(wa.T)                 # absorb a @ wa into center tap
    b2f = b2 @ wb                                      # (Cout,)

    # ---- per-tap weight matrices (tap, out, in), channel-padded, MXU dtype ----
    w1t = jnp.transpose(w1, (0, 1, 3, 2)).reshape(25, Cout, Cin)
    w1t = _padc(_padc(w1t, 1, Cop), 2, Cip).astype(mxu_dtype)
    w2t = jnp.transpose(w2f, (1, 2, 0, 3)).reshape(9, Cout, Cout)
    w2t = _padc(_padc(w2t, 1, Cop), 2, Cop).astype(mxu_dtype)
    b1p = _padc(b1.reshape(Cout, 1), 0, Cop)
    b2p = _padc(b2f.reshape(Cout, 1), 0, Cop)
    bns = _padc(bn_scale.reshape(Cin, 1), 0, Cip)
    bnb = _padc(bn_bias.reshape(Cin, 1), 0, Cip)

    # ---- input prep: channel pad, 4-row halo + 2-col pad, gather the H tiles --
    xp = _padc(x, 1, Cip)                                          # (N,Cip,H,W)
    xp = jnp.pad(xp, ((0, 0), (0, 0), (4, 4), (2, wp - W - 2)))    # (N,Cip,H+8,wp)
    xt = jnp.stack([xp[:, :, t * ht: t * ht + hbuf, :] for t in range(n_ht)],
                   axis=1)                                         # (N,n_ht,Cip,hbuf,wp)
    xt = xt.reshape(N, n_ht, Cip, hbuf * wp)
    xt = jnp.pad(xt, ((0, 0), (0, 0), (0, 0), (S, S)))             # lane slack -> TE

    # rough per-tile VMEM budget: double-buffered in/out blocks + resident
    # weights + in-kernel temporaries (xn, a, accumulators, mask, bf16 copies)
    est = 4 * (2 * Cip * TE + 2 * Cop * L + 25 * Cop * Cip + 9 * Cop * Cop
               + 7 * max(Cip, Cop) * PA)
    vmem_limit = int(min(64 * 2 ** 20, max(16 * 2 ** 20, 2 * est)))

    kern = functools.partial(_context_block_kernel, wp=wp, ht=ht, h_img=H,
                             w_img=W, mxu_dtype=mxu_dtype)
    out_t = pl.pallas_call(
        kern,
        out_shape=jax.ShapeDtypeStruct((N, n_ht, Cop, L), jnp.float32),
        grid_spec=pltpu.PrefetchScalarGridSpec(
            num_scalar_prefetch=0,
            grid=(N, n_ht),
            in_specs=[
                pl.BlockSpec((None, None, Cip, TE), lambda n, t: (n, t, 0, 0)),
                pl.BlockSpec((Cip, 1), lambda n, t: (0, 0)),
                pl.BlockSpec((Cip, 1), lambda n, t: (0, 0)),
                pl.BlockSpec((25, Cop, Cip), lambda n, t: (0, 0, 0)),
                pl.BlockSpec((Cop, 1), lambda n, t: (0, 0)),
                pl.BlockSpec((9, Cop, Cop), lambda n, t: (0, 0, 0)),
                pl.BlockSpec((Cop, 1), lambda n, t: (0, 0)),
            ],
            out_specs=pl.BlockSpec((None, None, Cop, L), lambda n, t: (n, t, 0, 0)),
        ),
        compiler_params=pltpu.CompilerParams(
            dimension_semantics=("parallel", "parallel"),
            vmem_limit_bytes=vmem_limit,
        ),
    )(xt, bns, bnb, w1t, b1p, w2t, b2p)

    # wrapper-side layout fix: reassemble H tiles, drop junk pad cols / channels
    out = out_t.reshape(N, n_ht, Cop, ht, wp)
    out = jnp.transpose(out, (0, 2, 1, 3, 4)).reshape(N, Cop, H, wp)
    return out[:, :Cout, :, 2:W + 2]


def init_params(key, cin, cout):
    ks = jax.random.split(key, 9)
    gamma = jax.random.uniform(ks[0], (cin,), jnp.float32, 0.5, 1.5)
    beta = jax.random.normal(ks[1], (cin,), jnp.float32) * 0.1
    rmean = jax.random.normal(ks[2], (cin,), jnp.float32) * 0.1
    rvar = jax.random.uniform(ks[3], (cin,), jnp.float32, 0.5, 1.5)
    eps = 1e-5
    bn_scale = gamma / jnp.sqrt(rvar + eps)
    bn_bias = beta - rmean * bn_scale
    w1 = jax.random.normal(ks[4], (5, 5, cin, cout), jnp.float32) / jnp.sqrt(5.0 * 5.0 * cin)
    b1 = jax.random.normal(ks[5], (cout,), jnp.float32) * 0.01
    w2 = jax.random.normal(ks[6], (3, 3, cout, cout), jnp.float32) / jnp.sqrt(3.0 * 3.0 * cout)
    b2 = jax.random.normal(ks[7], (cout,), jnp.float32) * 0.01
    watt = jax.random.normal(ks[8], (2 * cout, cout), jnp.float32) / jnp.sqrt(2.0 * cout)
    return bn_scale, bn_bias, w1, b1, w2, b2, watt


def reference_nchw(x_nchw, params):
    bn_scale, bn_bias, w1, b1, w2, b2, watt = params
    x = jnp.transpose(x_nchw, (0, 2, 3, 1)).astype(jnp.float32)
    xn = x * bn_scale + bn_bias
    dn = ('NHWC', 'HWIO', 'NHWC')
    a = lax.conv_general_dilated(xn, w1, (1, 1), [(2, 2), (2, 2)],
                                 dimension_numbers=dn) + b1
    a = jnp.where(a > 0, a, NEG_SLOPE * a)
    b = lax.conv_general_dilated(a, w2, (1, 1), [(2, 2), (2, 2)],
                                 rhs_dilation=(2, 2), dimension_numbers=dn) + b2
    cat = jnp.concatenate([a, b], axis=-1)
    out = jnp.einsum('nhwc,co->nhwo', cat, watt)
    return jnp.transpose(out, (0, 3, 1, 2))


if __name__ == "__main__":
    key = jax.random.PRNGKey(0)
    N, Cin, H, W = 2, 4, 16, 16
    Cout = 8
    kx, kp = jax.random.split(key)
    x_nchw = jax.random.normal(kx, (N, Cin, H, W), jnp.float32)
    params = init_params(kp, Cin, Cout)

    ref = reference_nchw(x_nchw, params)

    # Tight structural check (tiling, halos, masks, attention folding): f32 MXU.
    out_f32 = jax.block_until_ready(
        context_block(x_nchw, params, mxu_dtype=jnp.float32))
    assert out_f32.shape == (N, Cout, H, W), out_f32.shape
    err32 = float(jnp.max(jnp.abs(out_f32 - ref)))
    assert jnp.allclose(out_f32, ref, rtol=1e-4, atol=1e-4), f"f32 max abs err {err32}"

    # Default path: bf16 MXU operands with f32 accumulation (per perf review);
    # tolerance loosened accordingly (review's correctness note).
    out_bf16 = jax.block_until_ready(context_block(x_nchw, params))
    assert out_bf16.shape == (N, Cout, H, W), out_bf16.shape
    errbf = float(jnp.max(jnp.abs(out_bf16 - ref)))
    assert jnp.allclose(out_bf16, ref, rtol=5e-2, atol=8e-2), f"bf16 max abs err {errbf}"

    print("KERNEL_OK")
</pallas_src>

<mosaic_0001>
module attributes {stable_mosaic.version = 11 : i64} {
  func.func @_context_block_kernel(%arg0: i32, %arg1: i32, %arg2: memref<1x1x8x328xf32, #tpu.memory_space<vmem>>, %arg3: memref<8x1xf32, #tpu.memory_space<vmem>>, %arg4: memref<8x1xf32, #tpu.memory_space<vmem>>, %arg5: memref<25x8x8xf32, #tpu.memory_space<vmem>>, %arg6: memref<8x1xf32, #tpu.memory_space<vmem>>, %arg7: memref<9x8x8xf32, #tpu.memory_space<vmem>>, %arg8: memref<8x1xf32, #tpu.memory_space<vmem>>, %arg9: memref<1x1x8x160xf32, #tpu.memory_space<vmem>>) attributes {dimension_semantics = [#tpu.dimension_semantics<parallel>, #tpu.dimension_semantics<parallel>], iteration_bounds = array<i64: 2, 2>, scalar_prefetch = 0 : i64, scratch_operands = 0 : i64, tpu.core_type = #tpu.core_type<tc>, window_params = [{transform_indices = @transform_0, window_bounds = array<i64: 1, 1, 8, 328>}, {pipeline_mode = #tpu.pipeline_mode<synchronous>, transform_indices = @transform_1, window_bounds = array<i64: 8, 1>}, {pipeline_mode = #tpu.pipeline_mode<synchronous>, transform_indices = @transform_2, window_bounds = array<i64: 8, 1>}, {pipeline_mode = #tpu.pipeline_mode<synchronous>, transform_indices = @transform_3, window_bounds = array<i64: 25, 8, 8>}, {pipeline_mode = #tpu.pipeline_mode<synchronous>, transform_indices = @transform_4, window_bounds = array<i64: 8, 1>}, {pipeline_mode = #tpu.pipeline_mode<synchronous>, transform_indices = @transform_5, window_bounds = array<i64: 9, 8, 8>}, {pipeline_mode = #tpu.pipeline_mode<synchronous>, transform_indices = @transform_6, window_bounds = array<i64: 8, 1>}, {transform_indices = @transform_7, window_bounds = array<i64: 1, 1, 8, 160>}]} {
    %c8_i32 = arith.constant 8 : i32
    %0 = arith.muli %arg1, %c8_i32 : i32
    %1 = tpu.iota {dimensions = array<i32: 1>} : vector<1x20xi32>
    %c2_i32 = arith.constant 2 : i32
    %2 = vector.broadcast %c2_i32 : i32 to vector<1x20xi32>
    %3 = arith.cmpi sge, %1, %2 : vector<1x20xi32>
    %c18_i32 = arith.constant 18 : i32
    %4 = vector.broadcast %c18_i32 : i32 to vector<1x20xi32>
    %5 = arith.cmpi slt, %1, %4 : vector<1x20xi32>
    %6 = arith.andi %3, %5 : vector<1x20xi1>
    %cst = arith.constant 1.000000e+00 : f32
    %cst_0 = arith.constant 0.000000e+00 : f32
    %7 = vector.broadcast %cst : f32 to vector<1x20xf32>
    %8 = vector.broadcast %cst_0 : f32 to vector<1x20xf32>
    %9 = arith.select %6, %7, %8 : vector<1x20xi1>, vector<1x20xf32>
    %cst_1 = arith.constant 0.000000e+00 : f32
    %10 = vector.broadcast %cst_1 : f32 to vector<1x4xf32>
    %11 = tpu.concatenate %10, %9, %9, %9, %9, %9, %9, %9, %9, %9, %9, %9, %9, %9, %9, %9 in 1 : vector<1x4xf32>, vector<1x20xf32>, vector<1x20xf32>, vector<1x20xf32>, vector<1x20xf32>, vector<1x20xf32>, vector<1x20xf32>, vector<1x20xf32>, vector<1x20xf32>, vector<1x20xf32>, vector<1x20xf32>, vector<1x20xf32>, vector<1x20xf32>, vector<1x20xf32>, vector<1x20xf32>, vector<1x20xf32> -> vector<1x304xf32>
    %12 = tpu.concatenate %9, %10 in 1 : vector<1x20xf32>, vector<1x4xf32> -> vector<1x24xf32>
    %13 = tpu.concatenate %11, %12 in 1 : vector<1x304xf32>, vector<1x24xf32> -> vector<1x328xf32>
    %14 = tpu.iota {dimensions = array<i32: 1>} : vector<1x328xi32>
    %c4_i32 = arith.constant 4 : i32
    %15 = arith.subi %c4_i32, %0 : i32
    %c0_i32 = arith.constant 0 : i32
    %16 = arith.maxsi %c0_i32, %15 : i32
    %c20_i32 = arith.constant 20 : i32
    %17 = arith.subi %c20_i32, %0 : i32
    %c16_i32 = arith.constant 16 : i32
    %18 = arith.minsi %c16_i32, %17 : i32
    %c20_i32_2 = arith.constant 20 : i32
    %19 = arith.muli %16, %c20_i32_2 : i32
    %c4_i32_3 = arith.constant 4 : i32
    %20 = arith.addi %c4_i32_3, %19 : i32
    %21 = vector.broadcast %20 : i32 to vector<1x328xi32>
    %22 = arith.cmpi sge, %14, %21 : vector<1x328xi32>
    %c20_i32_4 = arith.constant 20 : i32
    %23 = arith.muli %18, %c20_i32_4 : i32
    %c4_i32_5 = arith.constant 4 : i32
    %24 = arith.addi %c4_i32_5, %23 : i32
    %25 = vector.broadcast %24 : i32 to vector<1x328xi32>
    %26 = arith.cmpi slt, %14, %25 : vector<1x328xi32>
    %27 = arith.andi %22, %26 : vector<1x328xi1>
    %28 = arith.extui %27 : vector<1x328xi1> to vector<1x328xi32>
    %29 = arith.sitofp %28 : vector<1x328xi32> to vector<1x328xf32>
    %30 = arith.mulf %13, %29 : vector<1x328xf32>
    %c0 = arith.constant 0 : index
    %c0_6 = arith.constant 0 : index
    %c0_7 = arith.constant 0 : index
    %c0_8 = arith.constant 0 : index
    %31 = vector.load %arg2[%c0, %c0_6, %c0_7, %c0_8] : memref<1x1x8x328xf32, #tpu.memory_space<vmem>>, vector<1x1x8x328xf32>
    %32 = vector.shape_cast %31 : vector<1x1x8x328xf32> to vector<8x328xf32>
    %c0_9 = arith.constant 0 : index
    %c0_10 = arith.constant 0 : index
    %33 = vector.load %arg3[%c0_9, %c0_10] : memref<8x1xf32, #tpu.memory_space<vmem>>, vector<8x1xf32>
    %34 = vector.broadcast %33 : vector<8x1xf32> to vector<8x328xf32>
    %35 = arith.mulf %32, %34 : vector<8x328xf32>
    %c0_11 = arith.constant 0 : index
    %c0_12 = arith.constant 0 : index
    %36 = vector.load %arg4[%c0_11, %c0_12] : memref<8x1xf32, #tpu.memory_space<vmem>>, vector<8x1xf32>
    %37 = vector.broadcast %36 : vector<8x1xf32> to vector<8x328xf32>
    %38 = vector.broadcast %30 : vector<1x328xf32> to vector<8x328xf32>
    %39 = arith.mulf %37, %38 : vector<8x328xf32>
    %40 = arith.addf %35, %39 : vector<8x328xf32>
    %cst_13 = arith.constant 0.000000e+00 : f32
    %41 = vector.broadcast %cst_13 : f32 to vector<8x244xf32>
    %c0_14 = arith.constant 0 : index
    %c0_15 = arith.constant 0 : index
    %c0_16 = arith.constant 0 : index
    %42 = vector.load %arg5[%c0_14, %c0_15, %c0_16] : memref<25x8x8xf32, #tpu.memory_space<vmem>>, vector<1x8x8xf32>
    %43 = vector.shape_cast %42 : vector<1x8x8xf32> to vector<8x8xf32>
    %44 = vector.extract_strided_slice %40 {offsets = [0, 0], sizes = [8, 244], strides = [1, 1]} : vector<8x328xf32> to vector<8x244xf32>
    %cst_17 = arith.constant dense<0.000000e+00> : vector<8x244xf32>
    %45 = tpu.matmul %43, %44, %cst_17 {dimension_numbers = #tpu.dot_dimension_numbers<[1], [0], [0], [1], [0, 0, 1, 1], [], []>} : vector<8x8xf32>, vector<8x244xf32>, vector<8x244xf32> -> vector<8x244xf32>
    %46 = arith.addf %41, %45 : vector<8x244xf32>
    %c1 = arith.constant 1 : index
    %c0_18 = arith.constant 0 : index
    %c0_19 = arith.constant 0 : index
    %47 = vector.load %arg5[%c1, %c0_18, %c0_19] : memref<25x8x8xf32, #tpu.memory_space<vmem>>, vector<1x8x8xf32>
    %48 = vector.shape_cast %47 : vector<1x8x8xf32> to vector<8x8xf32>
    %49 = vector.extract_strided_slice %40 {offsets = [0, 1], sizes = [8, 244], strides = [1, 1]} : vector<8x328xf32> to vector<8x244xf32>
    %cst_20 = arith.constant dense<0.000000e+00> : vector<8x244xf32>
    %50 = tpu.matmul %48, %49, %cst_20 {dimension_numbers = #tpu.dot_dimension_numbers<[1], [0], [0], [1], [0, 0, 1, 1], [], []>} : vector<8x8xf32>, vector<8x244xf32>, vector<8x244xf32> -> vector<8x244xf32>
    %51 = arith.addf %46, %50 : vector<8x244xf32>
    %c2 = arith.constant 2 : index
    %c0_21 = arith.constant 0 : index
    %c0_22 = arith.constant 0 : index
    %52 = vector.load %arg5[%c2, %c0_21, %c0_22] : memref<25x8x8xf32, #tpu.memory_space<vmem>>, vector<1x8x8xf32>
    %53 = vector.shape_cast %52 : vector<1x8x8xf32> to vector<8x8xf32>
    %54 = vector.extract_strided_slice %40 {offsets = [0, 2], sizes = [8, 244], strides = [1, 1]} : vector<8x328xf32> to vector<8x244xf32>
    %cst_23 = arith.constant dense<0.000000e+00> : vector<8x244xf32>
    %55 = tpu.matmul %53, %54, %cst_23 {dimension_numbers = #tpu.dot_dimension_numbers<[1], [0], [0], [1], [0, 0, 1, 1], [], []>} : vector<8x8xf32>, vector<8x244xf32>, vector<8x244xf32> -> vector<8x244xf32>
    %56 = arith.addf %51, %55 : vector<8x244xf32>
    %c3 = arith.constant 3 : index
    %c0_24 = arith.constant 0 : index
    %c0_25 = arith.constant 0 : index
    %57 = vector.load %arg5[%c3, %c0_24, %c0_25] : memref<25x8x8xf32, #tpu.memory_space<vmem>>, vector<1x8x8xf32>
    %58 = vector.shape_cast %57 : vector<1x8x8xf32> to vector<8x8xf32>
    %59 = vector.extract_strided_slice %40 {offsets = [0, 3], sizes = [8, 244], strides = [1, 1]} : vector<8x328xf32> to vector<8x244xf32>
    %cst_26 = arith.constant dense<0.000000e+00> : vector<8x244xf32>
    %60 = tpu.matmul %58, %59, %cst_26 {dimension_numbers = #tpu.dot_dimension_numbers<[1], [0], [0], [1], [0, 0, 1, 1], [], []>} : vector<8x8xf32>, vector<8x244xf32>, vector<8x244xf32> -> vector<8x244xf32>
    %61 = arith.addf %56, %60 : vector<8x244xf32>
    %c4 = arith.constant 4 : index
    %c0_27 = arith.constant 0 : index
    %c0_28 = arith.constant 0 : index
    %62 = vector.load %arg5[%c4, %c0_27, %c0_28] : memref<25x8x8xf32, #tpu.memory_space<vmem>>, vector<1x8x8xf32>
    %63 = vector.shape_cast %62 : vector<1x8x8xf32> to vector<8x8xf32>
    %64 = vector.extract_strided_slice %40 {offsets = [0, 4], sizes = [8, 244], strides = [1, 1]} : vector<8x328xf32> to vector<8x244xf32>
    %cst_29 = arith.constant dense<0.000000e+00> : vector<8x244xf32>
    %65 = tpu.matmul %63, %64, %cst_29 {dimension_numbers = #tpu.dot_dimension_numbers<[1], [0], [0], [1], [0, 0, 1, 1], [], []>} : vector<8x8xf32>, vector<8x244xf32>, vector<8x244xf32> -> vector<8x244xf32>
    %66 = arith.addf %61, %65 : vector<8x244xf32>
    %c5 = arith.constant 5 : index
    %c0_30 = arith.constant 0 : index
    %c0_31 = arith.constant 0 : index
    %67 = vector.load %arg5[%c5, %c0_30, %c0_31] : memref<25x8x8xf32, #tpu.memory_space<vmem>>, vector<1x8x8xf32>
    %68 = vector.shape_cast %67 : vector<1x8x8xf32> to vector<8x8xf32>
    %69 = vector.extract_strided_slice %40 {offsets = [0, 20], sizes = [8, 244], strides = [1, 1]} : vector<8x328xf32> to vector<8x244xf32>
    %cst_32 = arith.constant dense<0.000000e+00> : vector<8x244xf32>
    %70 = tpu.matmul %68, %69, %cst_32 {dimension_numbers = #tpu.dot_dimension_numbers<[1], [0], [0], [1], [0, 0, 1, 1], [], []>} : vector<8x8xf32>, vector<8x244xf32>, vector<8x244xf32> -> vector<8x244xf32>
    %71 = arith.addf %66, %70 : vector<8x244xf32>
    %c6 = arith.constant 6 : index
    %c0_33 = arith.constant 0 : index
    %c0_34 = arith.constant 0 : index
    %72 = vector.load %arg5[%c6, %c0_33, %c0_34] : memref<25x8x8xf32, #tpu.memory_space<vmem>>, vector<1x8x8xf32>
    %73 = vector.shape_cast %72 : vector<1x8x8xf32> to vector<8x8xf32>
    %74 = vector.extract_strided_slice %40 {offsets = [0, 21], sizes = [8, 244], strides = [1, 1]} : vector<8x328xf32> to vector<8x244xf32>
    %cst_35 = arith.constant dense<0.000000e+00> : vector<8x244xf32>
    %75 = tpu.matmul %73, %74, %cst_35 {dimension_numbers = #tpu.dot_dimension_numbers<[1], [0], [0], [1], [0, 0, 1, 1], [], []>} : vector<8x8xf32>, vector<8x244xf32>, vector<8x244xf32> -> vector<8x244xf32>
    %76 = arith.addf %71, %75 : vector<8x244xf32>
    %c7 = arith.constant 7 : index
    %c0_36 = arith.constant 0 : index
    %c0_37 = arith.constant 0 : index
    %77 = vector.load %arg5[%c7, %c0_36, %c0_37] : memref<25x8x8xf32, #tpu.memory_space<vmem>>, vector<1x8x8xf32>
    %78 = vector.shape_cast %77 : vector<1x8x8xf32> to vector<8x8xf32>
    %79 = vector.extract_strided_slice %40 {offsets = [0, 22], sizes = [8, 244], strides = [1, 1]} : vector<8x328xf32> to vector<8x244xf32>
    %cst_38 = arith.constant dense<0.000000e+00> : vector<8x244xf32>
    %80 = tpu.matmul %78, %79, %cst_38 {dimension_numbers = #tpu.dot_dimension_numbers<[1], [0], [0], [1], [0, 0, 1, 1], [], []>} : vector<8x8xf32>, vector<8x244xf32>, vector<8x244xf32> -> vector<8x244xf32>
    %81 = arith.addf %76, %80 : vector<8x244xf32>
    %c8 = arith.constant 8 : index
    %c0_39 = arith.constant 0 : index
    %c0_40 = arith.constant 0 : index
    %82 = vector.load %arg5[%c8, %c0_39, %c0_40] : memref<25x8x8xf32, #tpu.memory_space<vmem>>, vector<1x8x8xf32>
    %83 = vector.shape_cast %82 : vector<1x8x8xf32> to vector<8x8xf32>
    %84 = vector.extract_strided_slice %40 {offsets = [0, 23], sizes = [8, 244], strides = [1, 1]} : vector<8x328xf32> to vector<8x244xf32>
    %cst_41 = arith.constant dense<0.000000e+00> : vector<8x244xf32>
    %85 = tpu.matmul %83, %84, %cst_41 {dimension_numbers = #tpu.dot_dimension_numbers<[1], [0], [0], [1], [0, 0, 1, 1], [], []>} : vector<8x8xf32>, vector<8x244xf32>, vector<8x244xf32> -> vector<8x244xf32>
    %86 = arith.addf %81, %85 : vector<8x244xf32>
    %c9 = arith.constant 9 : index
    %c0_42 = arith.constant 0 : index
    %c0_43 = arith.constant 0 : index
    %87 = vector.load %arg5[%c9, %c0_42, %c0_43] : memref<25x8x8xf32, #tpu.memory_space<vmem>>, vector<1x8x8xf32>
    %88 = vector.shape_cast %87 : vector<1x8x8xf32> to vector<8x8xf32>
    %89 = vector.extract_strided_slice %40 {offsets = [0, 24], sizes = [8, 244], strides = [1, 1]} : vector<8x328xf32> to vector<8x244xf32>
    %cst_44 = arith.constant dense<0.000000e+00> : vector<8x244xf32>
    %90 = tpu.matmul %88, %89, %cst_44 {dimension_numbers = #tpu.dot_dimension_numbers<[1], [0], [0], [1], [0, 0, 1, 1], [], []>} : vector<8x8xf32>, vector<8x244xf32>, vector<8x244xf32> -> vector<8x244xf32>
    %91 = arith.addf %86, %90 : vector<8x244xf32>
    %c10 = arith.constant 10 : index
    %c0_45 = arith.constant 0 : index
    %c0_46 = arith.constant 0 : index
    %92 = vector.load %arg5[%c10, %c0_45, %c0_46] : memref<25x8x8xf32, #tpu.memory_space<vmem>>, vector<1x8x8xf32>
    %93 = vector.shape_cast %92 : vector<1x8x8xf32> to vector<8x8xf32>
    %94 = vector.extract_strided_slice %40 {offsets = [0, 40], sizes = [8, 244], strides = [1, 1]} : vector<8x328xf32> to vector<8x244xf32>
    %cst_47 = arith.constant dense<0.000000e+00> : vector<8x244xf32>
    %95 = tpu.matmul %93, %94, %cst_47 {dimension_numbers = #tpu.dot_dimension_numbers<[1], [0], [0], [1], [0, 0, 1, 1], [], []>} : vector<8x8xf32>, vector<8x244xf32>, vector<8x244xf32> -> vector<8x244xf32>
    %96 = arith.addf %91, %95 : vector<8x244xf32>
    %c11 = arith.constant 11 : index
    %c0_48 = arith.constant 0 : index
    %c0_49 = arith.constant 0 : index
    %97 = vector.load %arg5[%c11, %c0_48, %c0_49] : memref<25x8x8xf32, #tpu.memory_space<vmem>>, vector<1x8x8xf32>
    %98 = vector.shape_cast %97 : vector<1x8x8xf32> to vector<8x8xf32>
    %99 = vector.extract_strided_slice %40 {offsets = [0, 41], sizes = [8, 244], strides = [1, 1]} : vector<8x328xf32> to vector<8x244xf32>
    %cst_50 = arith.constant dense<0.000000e+00> : vector<8x244xf32>
    %100 = tpu.matmul %98, %99, %cst_50 {dimension_numbers = #tpu.dot_dimension_numbers<[1], [0], [0], [1], [0, 0, 1, 1], [], []>} : vector<8x8xf32>, vector<8x244xf32>, vector<8x244xf32> -> vector<8x244xf32>
    %101 = arith.addf %96, %100 : vector<8x244xf32>
    %c12 = arith.constant 12 : index
    %c0_51 = arith.constant 0 : index
    %c0_52 = arith.constant 0 : index
    %102 = vector.load %arg5[%c12, %c0_51, %c0_52] : memref<25x8x8xf32, #tpu.memory_space<vmem>>, vector<1x8x8xf32>
    %103 = vector.shape_cast %102 : vector<1x8x8xf32> to vector<8x8xf32>
    %104 = vector.extract_strided_slice %40 {offsets = [0, 42], sizes = [8, 244], strides = [1, 1]} : vector<8x328xf32> to vector<8x244xf32>
    %cst_53 = arith.constant dense<0.000000e+00> : vector<8x244xf32>
    %105 = tpu.matmul %103, %104, %cst_53 {dimension_numbers = #tpu.dot_dimension_numbers<[1], [0], [0], [1], [0, 0, 1, 1], [], []>} : vector<8x8xf32>, vector<8x244xf32>, vector<8x244xf32> -> vector<8x244xf32>
    %106 = arith.addf %101, %105 : vector<8x244xf32>
    %c13 = arith.constant 13 : index
    %c0_54 = arith.constant 0 : index
    %c0_55 = arith.constant 0 : index
    %107 = vector.load %arg5[%c13, %c0_54, %c0_55] : memref<25x8x8xf32, #tpu.memory_space<vmem>>, vector<1x8x8xf32>
    %108 = vector.shape_cast %107 : vector<1x8x8xf32> to vector<8x8xf32>
    %109 = vector.extract_strided_slice %40 {offsets = [0, 43], sizes = [8, 244], strides = [1, 1]} : vector<8x328xf32> to vector<8x244xf32>
    %cst_56 = arith.constant dense<0.000000e+00> : vector<8x244xf32>
    %110 = tpu.matmul %108, %109, %cst_56 {dimension_numbers = #tpu.dot_dimension_numbers<[1], [0], [0], [1], [0, 0, 1, 1], [], []>} : vector<8x8xf32>, vector<8x244xf32>, vector<8x244xf32> -> vector<8x244xf32>
    %111 = arith.addf %106, %110 : vector<8x244xf32>
    %c14 = arith.constant 14 : index
    %c0_57 = arith.constant 0 : index
    %c0_58 = arith.constant 0 : index
    %112 = vector.load %arg5[%c14, %c0_57, %c0_58] : memref<25x8x8xf32, #tpu.memory_space<vmem>>, vector<1x8x8xf32>
    %113 = vector.shape_cast %112 : vector<1x8x8xf32> to vector<8x8xf32>
    %114 = vector.extract_strided_slice %40 {offsets = [0, 44], sizes = [8, 244], strides = [1, 1]} : vector<8x328xf32> to vector<8x244xf32>
    %cst_59 = arith.constant dense<0.000000e+00> : vector<8x244xf32>
    %115 = tpu.matmul %113, %114, %cst_59 {dimension_numbers = #tpu.dot_dimension_numbers<[1], [0], [0], [1], [0, 0, 1, 1], [], []>} : vector<8x8xf32>, vector<8x244xf32>, vector<8x244xf32> -> vector<8x244xf32>
    %116 = arith.addf %111, %115 : vector<8x244xf32>
    %c15 = arith.constant 15 : index
    %c0_60 = arith.constant 0 : index
    %c0_61 = arith.constant 0 : index
    %117 = vector.load %arg5[%c15, %c0_60, %c0_61] : memref<25x8x8xf32, #tpu.memory_space<vmem>>, vector<1x8x8xf32>
    %118 = vector.shape_cast %117 : vector<1x8x8xf32> to vector<8x8xf32>
    %119 = vector.extract_strided_slice %40 {offsets = [0, 60], sizes = [8, 244], strides = [1, 1]} : vector<8x328xf32> to vector<8x244xf32>
    %cst_62 = arith.constant dense<0.000000e+00> : vector<8x244xf32>
    %120 = tpu.matmul %118, %119, %cst_62 {dimension_numbers = #tpu.dot_dimension_numbers<[1], [0], [0], [1], [0, 0, 1, 1], [], []>} : vector<8x8xf32>, vector<8x244xf32>, vector<8x244xf32> -> vector<8x244xf32>
    %121 = arith.addf %116, %120 : vector<8x244xf32>
    %c16 = arith.constant 16 : index
    %c0_63 = arith.constant 0 : index
    %c0_64 = arith.constant 0 : index
    %122 = vector.load %arg5[%c16, %c0_63, %c0_64] : memref<25x8x8xf32, #tpu.memory_space<vmem>>, vector<1x8x8xf32>
    %123 = vector.shape_cast %122 : vector<1x8x8xf32> to vector<8x8xf32>
    %124 = vector.extract_strided_slice %40 {offsets = [0, 61], sizes = [8, 244], strides = [1, 1]} : vector<8x328xf32> to vector<8x244xf32>
    %cst_65 = arith.constant dense<0.000000e+00> : vector<8x244xf32>
    %125 = tpu.matmul %123, %124, %cst_65 {dimension_numbers = #tpu.dot_dimension_numbers<[1], [0], [0], [1], [0, 0, 1, 1], [], []>} : vector<8x8xf32>, vector<8x244xf32>, vector<8x244xf32> -> vector<8x244xf32>
    %126 = arith.addf %121, %125 : vector<8x244xf32>
    %c17 = arith.constant 17 : index
    %c0_66 = arith.constant 0 : index
    %c0_67 = arith.constant 0 : index
    %127 = vector.load %arg5[%c17, %c0_66, %c0_67] : memref<25x8x8xf32, #tpu.memory_space<vmem>>, vector<1x8x8xf32>
    %128 = vector.shape_cast %127 : vector<1x8x8xf32> to vector<8x8xf32>
    %129 = vector.extract_strided_slice %40 {offsets = [0, 62], sizes = [8, 244], strides = [1, 1]} : vector<8x328xf32> to vector<8x244xf32>
    %cst_68 = arith.constant dense<0.000000e+00> : vector<8x244xf32>
    %130 = tpu.matmul %128, %129, %cst_68 {dimension_numbers = #tpu.dot_dimension_numbers<[1], [0], [0], [1], [0, 0, 1, 1], [], []>} : vector<8x8xf32>, vector<8x244xf32>, vector<8x244xf32> -> vector<8x244xf32>
    %131 = arith.addf %126, %130 : vector<8x244xf32>
    %c18 = arith.constant 18 : index
    %c0_69 = arith.constant 0 : index
    %c0_70 = arith.constant 0 : index
    %132 = vector.load %arg5[%c18, %c0_69, %c0_70] : memref<25x8x8xf32, #tpu.memory_space<vmem>>, vector<1x8x8xf32>
    %133 = vector.shape_cast %132 : vector<1x8x8xf32> to vector<8x8xf32>
    %134 = vector.extract_strided_slice %40 {offsets = [0, 63], sizes = [8, 244], strides = [1, 1]} : vector<8x328xf32> to vector<8x244xf32>
    %cst_71 = arith.constant dense<0.000000e+00> : vector<8x244xf32>
    %135 = tpu.matmul %133, %134, %cst_71 {dimension_numbers = #tpu.dot_dimension_numbers<[1], [0], [0], [1], [0, 0, 1, 1], [], []>} : vector<8x8xf32>, vector<8x244xf32>, vector<8x244xf32> -> vector<8x244xf32>
    %136 = arith.addf %131, %135 : vector<8x244xf32>
    %c19 = arith.constant 19 : index
    %c0_72 = arith.constant 0 : index
    %c0_73 = arith.constant 0 : index
    %137 = vector.load %arg5[%c19, %c0_72, %c0_73] : memref<25x8x8xf32, #tpu.memory_space<vmem>>, vector<1x8x8xf32>
    %138 = vector.shape_cast %137 : vector<1x8x8xf32> to vector<8x8xf32>
    %139 = vector.extract_strided_slice %40 {offsets = [0, 64], sizes = [8, 244], strides = [1, 1]} : vector<8x328xf32> to vector<8x244xf32>
    %cst_74 = arith.constant dense<0.000000e+00> : vector<8x244xf32>
    %140 = tpu.matmul %138, %139, %cst_74 {dimension_numbers = #tpu.dot_dimension_numbers<[1], [0], [0], [1], [0, 0, 1, 1], [], []>} : vector<8x8xf32>, vector<8x244xf32>, vector<8x244xf32> -> vector<8x244xf32>
    %141 = arith.addf %136, %140 : vector<8x244xf32>
    %c20 = arith.constant 20 : index
    %c0_75 = arith.constant 0 : index
    %c0_76 = arith.constant 0 : index
    %142 = vector.load %arg5[%c20, %c0_75, %c0_76] : memref<25x8x8xf32, #tpu.memory_space<vmem>>, vector<1x8x8xf32>
    %143 = vector.shape_cast %142 : vector<1x8x8xf32> to vector<8x8xf32>
    %144 = vector.extract_strided_slice %40 {offsets = [0, 80], sizes = [8, 244], strides = [1, 1]} : vector<8x328xf32> to vector<8x244xf32>
    %cst_77 = arith.constant dense<0.000000e+00> : vector<8x244xf32>
    %145 = tpu.matmul %143, %144, %cst_77 {dimension_numbers = #tpu.dot_dimension_numbers<[1], [0], [0], [1], [0, 0, 1, 1], [], []>} : vector<8x8xf32>, vector<8x244xf32>, vector<8x244xf32> -> vector<8x244xf32>
    %146 = arith.addf %141, %145 : vector<8x244xf32>
    %c21 = arith.constant 21 : index
    %c0_78 = arith.constant 0 : index
    %c0_79 = arith.constant 0 : index
    %147 = vector.load %arg5[%c21, %c0_78, %c0_79] : memref<25x8x8xf32, #tpu.memory_space<vmem>>, vector<1x8x8xf32>
    %148 = vector.shape_cast %147 : vector<1x8x8xf32> to vector<8x8xf32>
    %149 = vector.extract_strided_slice %40 {offsets = [0, 81], sizes = [8, 244], strides = [1, 1]} : vector<8x328xf32> to vector<8x244xf32>
    %cst_80 = arith.constant dense<0.000000e+00> : vector<8x244xf32>
    %150 = tpu.matmul %148, %149, %cst_80 {dimension_numbers = #tpu.dot_dimension_numbers<[1], [0], [0], [1], [0, 0, 1, 1], [], []>} : vector<8x8xf32>, vector<8x244xf32>, vector<8x244xf32> -> vector<8x244xf32>
    %151 = arith.addf %146, %150 : vector<8x244xf32>
    %c22 = arith.constant 22 : index
    %c0_81 = arith.constant 0 : index
    %c0_82 = arith.constant 0 : index
    %152 = vector.load %arg5[%c22, %c0_81, %c0_82] : memref<25x8x8xf32, #tpu.memory_space<vmem>>, vector<1x8x8xf32>
    %153 = vector.shape_cast %152 : vector<1x8x8xf32> to vector<8x8xf32>
    %154 = vector.extract_strided_slice %40 {offsets = [0, 82], sizes = [8, 244], strides = [1, 1]} : vector<8x328xf32> to vector<8x244xf32>
    %cst_83 = arith.constant dense<0.000000e+00> : vector<8x244xf32>
    %155 = tpu.matmul %153, %154, %cst_83 {dimension_numbers = #tpu.dot_dimension_numbers<[1], [0], [0], [1], [0, 0, 1, 1], [], []>} : vector<8x8xf32>, vector<8x244xf32>, vector<8x244xf32> -> vector<8x244xf32>
    %156 = arith.addf %151, %155 : vector<8x244xf32>
    %c23 = arith.constant 23 : index
    %c0_84 = arith.constant 0 : index
    %c0_85 = arith.constant 0 : index
    %157 = vector.load %arg5[%c23, %c0_84, %c0_85] : memref<25x8x8xf32, #tpu.memory_space<vmem>>, vector<1x8x8xf32>
    %158 = vector.shape_cast %157 : vector<1x8x8xf32> to vector<8x8xf32>
    %159 = vector.extract_strided_slice %40 {offsets = [0, 83], sizes = [8, 244], strides = [1, 1]} : vector<8x328xf32> to vector<8x244xf32>
    %cst_86 = arith.constant dense<0.000000e+00> : vector<8x244xf32>
    %160 = tpu.matmul %158, %159, %cst_86 {dimension_numbers = #tpu.dot_dimension_numbers<[1], [0], [0], [1], [0, 0, 1, 1], [], []>} : vector<8x8xf32>, vector<8x244xf32>, vector<8x244xf32> -> vector<8x244xf32>
    %161 = arith.addf %156, %160 : vector<8x244xf32>
    %c24 = arith.constant 24 : index
    %c0_87 = arith.constant 0 : index
    %c0_88 = arith.constant 0 : index
    %162 = vector.load %arg5[%c24, %c0_87, %c0_88] : memref<25x8x8xf32, #tpu.memory_space<vmem>>, vector<1x8x8xf32>
    %163 = vector.shape_cast %162 : vector<1x8x8xf32> to vector<8x8xf32>
    %164 = vector.extract_strided_slice %40 {offsets = [0, 84], sizes = [8, 244], strides = [1, 1]} : vector<8x328xf32> to vector<8x244xf32>
    %cst_89 = arith.constant dense<0.000000e+00> : vector<8x244xf32>
    %165 = tpu.matmul %163, %164, %cst_89 {dimension_numbers = #tpu.dot_dimension_numbers<[1], [0], [0], [1], [0, 0, 1, 1], [], []>} : vector<8x8xf32>, vector<8x244xf32>, vector<8x244xf32> -> vector<8x244xf32>
    %166 = arith.addf %161, %165 : vector<8x244xf32>
    %c0_90 = arith.constant 0 : index
    %c0_91 = arith.constant 0 : index
    %167 = vector.load %arg6[%c0_90, %c0_91] : memref<8x1xf32, #tpu.memory_space<vmem>>, vector<8x1xf32>
    %168 = vector.broadcast %167 : vector<8x1xf32> to vector<8x244xf32>
    %169 = arith.addf %166, %168 : vector<8x244xf32>
    %cst_92 = arith.constant 0.000000e+00 : f32
    %170 = vector.broadcast %cst_92 : f32 to vector<8x244xf32>
    %171 = arith.cmpf ogt, %169, %170 : vector<8x244xf32>
    %cst_93 = arith.constant 0.00999999977 : f32
    %172 = vector.broadcast %cst_93 : f32 to vector<8x244xf32>
    %173 = arith.mulf %172, %169 : vector<8x244xf32>
    %174 = arith.select %171, %169, %173 : vector<8x244xi1>, vector<8x244xf32>
    %175 = vector.extract_strided_slice %30 {offsets = [0, 42], sizes = [1, 244], strides = [1, 1]} : vector<1x328xf32> to vector<1x244xf32>
    %176 = vector.broadcast %175 : vector<1x244xf32> to vector<8x244xf32>
    %177 = arith.mulf %174, %176 : vector<8x244xf32>
    %cst_94 = arith.constant 0.000000e+00 : f32
    %178 = vector.broadcast %cst_94 : f32 to vector<8x160xf32>
    %c0_95 = arith.constant 0 : index
    %c0_96 = arith.constant 0 : index
    %c0_97 = arith.constant 0 : index
    %179 = vector.load %arg7[%c0_95, %c0_96, %c0_97] : memref<9x8x8xf32, #tpu.memory_space<vmem>>, vector<1x8x8xf32>
    %180 = vector.shape_cast %179 : vector<1x8x8xf32> to vector<8x8xf32>
    %181 = vector.extract_strided_slice %177 {offsets = [0, 0], sizes = [8, 160], strides = [1, 1]} : vector<8x244xf32> to vector<8x160xf32>
    %cst_98 = arith.constant dense<0.000000e+00> : vector<8x160xf32>
    %182 = tpu.matmul %180, %181, %cst_98 {dimension_numbers = #tpu.dot_dimension_numbers<[1], [0], [0], [1], [0, 0, 1, 1], [], []>} : vector<8x8xf32>, vector<8x160xf32>, vector<8x160xf32> -> vector<8x160xf32>
    %183 = arith.addf %178, %182 : vector<8x160xf32>
    %c1_99 = arith.constant 1 : index
    %c0_100 = arith.constant 0 : index
    %c0_101 = arith.constant 0 : index
    %184 = vector.load %arg7[%c1_99, %c0_100, %c0_101] : memref<9x8x8xf32, #tpu.memory_space<vmem>>, vector<1x8x8xf32>
    %185 = vector.shape_cast %184 : vector<1x8x8xf32> to vector<8x8xf32>
    %186 = vector.extract_strided_slice %177 {offsets = [0, 2], sizes = [8, 160], strides = [1, 1]} : vector<8x244xf32> to vector<8x160xf32>
    %cst_102 = arith.constant dense<0.000000e+00> : vector<8x160xf32>
    %187 = tpu.matmul %185, %186, %cst_102 {dimension_numbers = #tpu.dot_dimension_numbers<[1], [0], [0], [1], [0, 0, 1, 1], [], []>} : vector<8x8xf32>, vector<8x160xf32>, vector<8x160xf32> -> vector<8x160xf32>
    %188 = arith.addf %183, %187 : vector<8x160xf32>
    %c2_103 = arith.constant 2 : index
    %c0_104 = arith.constant 0 : index
    %c0_105 = arith.constant 0 : index
    %189 = vector.load %arg7[%c2_103, %c0_104, %c0_105] : memref<9x8x8xf32, #tpu.memory_space<vmem>>, vector<1x8x8xf32>
    %190 = vector.shape_cast %189 : vector<1x8x8xf32> to vector<8x8xf32>
    %191 = vector.extract_strided_slice %177 {offsets = [0, 4], sizes = [8, 160], strides = [1, 1]} : vector<8x244xf32> to vector<8x160xf32>
    %cst_106 = arith.constant dense<0.000000e+00> : vector<8x160xf32>
    %192 = tpu.matmul %190, %191, %cst_106 {dimension_numbers = #tpu.dot_dimension_numbers<[1], [0], [0], [1], [0, 0, 1, 1], [], []>} : vector<8x8xf32>, vector<8x160xf32>, vector<8x160xf32> -> vector<8x160xf32>
    %193 = arith.addf %188, %192 : vector<8x160xf32>
    %c3_107 = arith.constant 3 : index
    %c0_108 = arith.constant 0 : index
    %c0_109 = arith.constant 0 : index
    %194 = vector.load %arg7[%c3_107, %c0_108, %c0_109] : memref<9x8x8xf32, #tpu.memory_space<vmem>>, vector<1x8x8xf32>
    %195 = vector.shape_cast %194 : vector<1x8x8xf32> to vector<8x8xf32>
    %196 = vector.extract_strided_slice %177 {offsets = [0, 40], sizes = [8, 160], strides = [1, 1]} : vector<8x244xf32> to vector<8x160xf32>
    %cst_110 = arith.constant dense<0.000000e+00> : vector<8x160xf32>
    %197 = tpu.matmul %195, %196, %cst_110 {dimension_numbers = #tpu.dot_dimension_numbers<[1], [0], [0], [1], [0, 0, 1, 1], [], []>} : vector<8x8xf32>, vector<8x160xf32>, vector<8x160xf32> -> vector<8x160xf32>
    %198 = arith.addf %193, %197 : vector<8x160xf32>
    %c4_111 = arith.constant 4 : index
    %c0_112 = arith.constant 0 : index
    %c0_113 = arith.constant 0 : index
    %199 = vector.load %arg7[%c4_111, %c0_112, %c0_113] : memref<9x8x8xf32, #tpu.memory_space<vmem>>, vector<1x8x8xf32>
    %200 = vector.shape_cast %199 : vector<1x8x8xf32> to vector<8x8xf32>
    %201 = vector.extract_strided_slice %177 {offsets = [0, 42], sizes = [8, 160], strides = [1, 1]} : vector<8x244xf32> to vector<8x160xf32>
    %cst_114 = arith.constant dense<0.000000e+00> : vector<8x160xf32>
    %202 = tpu.matmul %200, %201, %cst_114 {dimension_numbers = #tpu.dot_dimension_numbers<[1], [0], [0], [1], [0, 0, 1, 1], [], []>} : vector<8x8xf32>, vector<8x160xf32>, vector<8x160xf32> -> vector<8x160xf32>
    %203 = arith.addf %198, %202 : vector<8x160xf32>
    %c5_115 = arith.constant 5 : index
    %c0_116 = arith.constant 0 : index
    %c0_117 = arith.constant 0 : index
    %204 = vector.load %arg7[%c5_115, %c0_116, %c0_117] : memref<9x8x8xf32, #tpu.memory_space<vmem>>, vector<1x8x8xf32>
    %205 = vector.shape_cast %204 : vector<1x8x8xf32> to vector<8x8xf32>
    %206 = vector.extract_strided_slice %177 {offsets = [0, 44], sizes = [8, 160], strides = [1, 1]} : vector<8x244xf32> to vector<8x160xf32>
    %cst_118 = arith.constant dense<0.000000e+00> : vector<8x160xf32>
    %207 = tpu.matmul %205, %206, %cst_118 {dimension_numbers = #tpu.dot_dimension_numbers<[1], [0], [0], [1], [0, 0, 1, 1], [], []>} : vector<8x8xf32>, vector<8x160xf32>, vector<8x160xf32> -> vector<8x160xf32>
    %208 = arith.addf %203, %207 : vector<8x160xf32>
    %c6_119 = arith.constant 6 : index
    %c0_120 = arith.constant 0 : index
    %c0_121 = arith.constant 0 : index
    %209 = vector.load %arg7[%c6_119, %c0_120, %c0_121] : memref<9x8x8xf32, #tpu.memory_space<vmem>>, vector<1x8x8xf32>
    %210 = vector.shape_cast %209 : vector<1x8x8xf32> to vector<8x8xf32>
    %211 = vector.extract_strided_slice %177 {offsets = [0, 80], sizes = [8, 160], strides = [1, 1]} : vector<8x244xf32> to vector<8x160xf32>
    %cst_122 = arith.constant dense<0.000000e+00> : vector<8x160xf32>
    %212 = tpu.matmul %210, %211, %cst_122 {dimension_numbers = #tpu.dot_dimension_numbers<[1], [0], [0], [1], [0, 0, 1, 1], [], []>} : vector<8x8xf32>, vector<8x160xf32>, vector<8x160xf32> -> vector<8x160xf32>
    %213 = arith.addf %208, %212 : vector<8x160xf32>
    %c7_123 = arith.constant 7 : index
    %c0_124 = arith.constant 0 : index
    %c0_125 = arith.constant 0 : index
    %214 = vector.load %arg7[%c7_123, %c0_124, %c0_125] : memref<9x8x8xf32, #tpu.memory_space<vmem>>, vector<1x8x8xf32>
    %215 = vector.shape_cast %214 : vector<1x8x8xf32> to vector<8x8xf32>
    %216 = vector.extract_strided_slice %177 {offsets = [0, 82], sizes = [8, 160], strides = [1, 1]} : vector<8x244xf32> to vector<8x160xf32>
    %cst_126 = arith.constant dense<0.000000e+00> : vector<8x160xf32>
    %217 = tpu.matmul %215, %216, %cst_126 {dimension_numbers = #tpu.dot_dimension_numbers<[1], [0], [0], [1], [0, 0, 1, 1], [], []>} : vector<8x8xf32>, vector<8x160xf32>, vector<8x160xf32> -> vector<8x160xf32>
    %218 = arith.addf %213, %217 : vector<8x160xf32>
    %c8_127 = arith.constant 8 : index
    %c0_128 = arith.constant 0 : index
    %c0_129 = arith.constant 0 : index
    %219 = vector.load %arg7[%c8_127, %c0_128, %c0_129] : memref<9x8x8xf32, #tpu.memory_space<vmem>>, vector<1x8x8xf32>
    %220 = vector.shape_cast %219 : vector<1x8x8xf32> to vector<8x8xf32>
    %221 = vector.extract_strided_slice %177 {offsets = [0, 84], sizes = [8, 160], strides = [1, 1]} : vector<8x244xf32> to vector<8x160xf32>
    %cst_130 = arith.constant dense<0.000000e+00> : vector<8x160xf32>
    %222 = tpu.matmul %220, %221, %cst_130 {dimension_numbers = #tpu.dot_dimension_numbers<[1], [0], [0], [1], [0, 0, 1, 1], [], []>} : vector<8x8xf32>, vector<8x160xf32>, vector<8x160xf32> -> vector<8x160xf32>
    %223 = arith.addf %218, %222 : vector<8x160xf32>
    %c0_131 = arith.constant 0 : index
    %c0_132 = arith.constant 0 : index
    %224 = vector.load %arg8[%c0_131, %c0_132] : memref<8x1xf32, #tpu.memory_space<vmem>>, vector<8x1xf32>
    %225 = vector.broadcast %224 : vector<8x1xf32> to vector<8x160xf32>
    %226 = arith.addf %223, %225 : vector<8x160xf32>
    %c0_133 = arith.constant 0 : index
    %c0_134 = arith.constant 0 : index
    %c0_135 = arith.constant 0 : index
    %c0_136 = arith.constant 0 : index
    %227 = vector.load %arg9[%c0_133, %c0_134, %c0_135, %c0_136] : memref<1x1x8x160xf32, #tpu.memory_space<vmem>>, vector<1x1x8x160xf32>
    %228 = vector.shape_cast %227 : vector<1x1x8x160xf32> to vector<8x160xf32>
    %229 = vector.shape_cast %226 : vector<8x160xf32> to vector<1x1x8x160xf32>
    tpu.vector_store %arg9[%c0_133, %c0_134, %c0_135, %c0_136], %229 {strides = array<i32>} : memref<1x1x8x160xf32, #tpu.memory_space<vmem>>, vector<1x1x8x160xf32>,
    return
  }
  func.func @transform_0(%arg0: i32, %arg1: i32) -> (i32, i32, i32, i32) {
    %c0_i32 = arith.constant 0 : i32
    %c0_i32_0 = arith.constant 0 : i32
    %c0_i32_1 = arith.constant 0 : i32
    return %arg0, %arg1, %c0_i32, %c0_i32_0 : i32, i32, i32, i32
  }
  func.func @transform_1(%arg0: i32, %arg1: i32) -> (i32, i32) {
    %c0_i32 = arith.constant 0 : i32
    %c0_i32_0 = arith.constant 0 : i32
    %c0_i32_1 = arith.constant 0 : i32
    return %c0_i32, %c0_i32_0 : i32, i32
  }
  func.func @transform_2(%arg0: i32, %arg1: i32) -> (i32, i32) {
    %c0_i32 = arith.constant 0 : i32
    %c0_i32_0 = arith.constant 0 : i32
    %c0_i32_1 = arith.constant 0 : i32
    return %c0_i32, %c0_i32_0 : i32, i32
  }
  func.func @transform_3(%arg0: i32, %arg1: i32) -> (i32, i32, i32) {
    %c0_i32 = arith.constant 0 : i32
    %c0_i32_0 = arith.constant 0 : i32
    %c0_i32_1 = arith.constant 0 : i32
    %c0_i32_2 = arith.constant 0 : i32
    return %c0_i32, %c0_i32_0, %c0_i32_1 : i32, i32, i32
  }
  func.func @transform_4(%arg0: i32, %arg1: i32) -> (i32, i32) {
    %c0_i32 = arith.constant 0 : i32
    %c0_i32_0 = arith.constant 0 : i32
    %c0_i32_1 = arith.constant 0 : i32
    return %c0_i32, %c0_i32_0 : i32, i32
  }
  func.func @transform_5(%arg0: i32, %arg1: i32) -> (i32, i32, i32) {
    %c0_i32 = arith.constant 0 : i32
    %c0_i32_0 = arith.constant 0 : i32
    %c0_i32_1 = arith.constant 0 : i32
    %c0_i32_2 = arith.constant 0 : i32
    return %c0_i32, %c0_i32_0, %c0_i32_1 : i32, i32, i32
  }
  func.func @transform_6(%arg0: i32, %arg1: i32) -> (i32, i32) {
    %c0_i32 = arith.constant 0 : i32
    %c0_i32_0 = arith.constant 0 : i32
    %c0_i32_1 = arith.constant 0 : i32
    return %c0_i32, %c0_i32_0 : i32, i32
  }
  func.func @transform_7(%arg0: i32, %arg1: i32) -> (i32, i32, i32, i32) {
    %c0_i32 = arith.constant 0 : i32
    %c0_i32_0 = arith.constant 0 : i32
    %c0_i32_1 = arith.constant 0 : i32
    return %arg0, %arg1, %c0_i32, %c0_i32_0 : i32, i32, i32, i32
  }
}

</mosaic_0001>

<bundles_post_ra>
// kernel: tpu_custom_call.1
= control target key start
LH: loop header
LB: loop body
LE: loop exit
PB: predicated region body
PF: predicated region fallthrough
CT: control target
= control target key end

     0   :  { %s4546_s0 = inlined_call_operand.vmem [shape: f32[2,2,8,328], index: 0, kind: input, shape index: {}]   ;;  %s4547_s1 = inlined_call_operand.vmem [shape: f32[8,1], index: 1, kind: input, shape index: {}]   ;;  %s4548_s2 = inlined_call_operand.vmem [shape: f32[8,1], index: 2, kind: input, shape index: {}]   ;;  %s4549_s3 = inlined_call_operand.vmem [shape: f32[25,8,8], index: 3, kind: input, shape index: {}]   ;;  %s4550_s4 = inlined_call_operand.vmem [shape: f32[8,1], index: 4, kind: input, shape index: {}]   ;;  %s4551_s5 = inlined_call_operand.vmem [shape: f32[9,8,8], index: 5, kind: input, shape index: {}]   ;;  %s4552_s6 = inlined_call_operand.vmem [shape: f32[8,1], index: 6, kind: input, shape index: {}]   ;;  %s4553_s7 = inlined_call_operand.hbm [shape: f32[2,2,8,160], index: 7, kind: output, shape index: {}]  }
   0x1   :  { %4572 = sst [smem:[#allocation5_spill]] %s4546_s0 }
   0x2   :  { %12 = vsyncpa [#allocation3], 0 }
   0x3   :  { %14 = vsyncpa [#allocation3 + $0x1], 0  ;;  %s3983_s24 = smov 0   ;;  %s3985_s25 = smov 0  }
   0x4   :  { %s3987_s26 = smov 0   ;;  %s3989_s27 = smov 0  }
   0x5   :  { %s3991_s28 = smov 0   ;;  %s3993_s29 = smov 0  }
   0x6   :  { %s3995_s30 = smov 0   ;;  %s3997_s8 = smov 0  }
   0x7 LB: > { %s3552_s9 = sadd.s32 4294967295, %s3904_s8   ;;  %s3553_s10 = sadd.s32 4294967294, %s3904_s8   ;;  %s3904_s8 = sphi %s3997_s8, %s20_s8   ;;  %s3900_s30 = sphi %s3995_s30, %s4600_s30   ;;  %s3896_s29 = sphi %s3993_s29, %s4599_s29   ;;  %s3892_s28 = sphi %s3991_s28, %s4598_s28   ;;  %s3888_s27 = sphi %s3989_s27, %s4597_s27   ;;  %s3884_s26 = sphi %s3987_s26, %s4596_s26   ;;  %s3880_s25 = sphi %s3985_s25, %s4595_s25   ;;  %s3876_s24 = sphi %s3983_s24, %s4594_s24  }
   0x8   : > { %s29_s11 = sadd.s32 1, %s3896_s29  ;;  %s32_s12 = sadd.s32 1, %s3900_s30 }
   0x9   : > { %p30_p0 = scmp.ge.s32.totalorder %s29_s11, 2  ;;  %p205_p1 = scmp.ne.s32.totalorder %s3884_s26, %s3880_s25 }
   0xa   : > { %p206_p2 = scmp.eq.s32.totalorder %s3552_s9, 3  ;;  %p211_p5 = scmp.ne.s32.totalorder %s3880_s25, %s3876_s24 }
   0xb   : > { %s4602_s11 = smov (%p30_p0, %s29_s11), 0  ;;  %s4604_s12 = smov (!%p30_p0, %s32_s12), %s3900_s30 }
   0xc   : > { %s191_s13 = ssub.s32 %s3896_s29, %s4602_s11  ;;  %p4034_p3 = por %p206_p2, %p205_p1 }
   0xd   : > { %p34_p4 = scmp.ge.s32.totalorder %s4604_s12, 2  ;;  %p212_p6 = scmp.eq.s32.totalorder %s3553_s10, 3 }
   0xe   : > { %p3556_p7 = scmp.ge.s32.totalorder %s3904_s8, 1  ;;  %p260_p9 = scmp.lt.s32.totalorder %s3904_s8, 5 }
   0xf   : > { %s4606_s12 = smov (%p34_p4, %s4604_s12), 0  ;;  %p4043_p8 = por %p212_p6, %p211_p5 }
  0x10   : > { %s190_s16 = ssub.s32 %s3900_s30, %s4606_s12  ;;  %s195_s17 = sadd.s32 1, %s3884_s26 }
  0x11   : > { %s192_s18 = sor.u32 %s191_s13, %s190_s16  ;;  %p261_p10 = pnand %p3556_p7, %p260_p9 }
  0x12   : > { %p193_p11 = scmp.eq.s32.totalorder %s192_s18, 0  ;;  %v306_v0 = vlaneseq (!%p261_p10)  ;;  %v3906_v1 = vmov (!%p261_p10), 0   ;;  %v3907_v3 = vmov (!%p261_p10), 0.0   ;;  %s3908_s20 = smov (!%p261_p10), 16   ;;  %v431_v5 = vld [vmem:[%s4547_s1] sm:$0xff] (!%p261_p10)  ;;  %vm388_vm3 = vcmask (!%p261_p10), 162816  }
  0x13   : > { %264 = sbr.rel (%p261_p10) target bundleno = 1076 (0x434), region = 48  ;;  %3808 = vset.pattern.permute.xlu1 (!%p261_p10), %v3906_v1  ;;  %3809 = vset.pattern.permute.xlu0 (!%p261_p10), %v3906_v1  ;;  %s3909_s21 = smov (!%p261_p10), 4   ;;  %v440_v6 = vld [vmem:[%s4548_s2] sm:$0xff] (!%p261_p10)  ;;  %vm372_vm4 = vcmask (!%p261_p10), 130048   ;;  %vm358_vm7 = vcmask (!%p261_p10), 31744   ;;  %vm374_vm9 = vcmask (!%p261_p10), 293888  }
  0x14   : > { %s4052_s19 = scalar_select %p193_p11, %s3884_s26, %s195_s17  }
  0x15   : > { %v4055_v2 = vand.u32 (!%p261_p10), 127, %v306_v0  ;;  %1230 = vmatprep.mubr.f32.mxu0 (!%p261_p10), %v3907_v3  ;;  %544 = vmatprep.mubr.f32.mxu1 (!%p261_p10), %v3907_v3  ;;  %s3910_s22 = smov (!%p261_p10), 24   ;;  %s4554_s23 = smov (!%p261_p10), 124   ;;  %vm376_vm12 = vcmask (!%p261_p10), 457728   ;;  %v447_v26 = vshrl.u32 (!%p261_p10), %v306_v0, 7  ;;  %vm378_vm13 = vcmask (!%p261_p10), 621568  }
  0x16   : > { %s4556_s9 = smov (!%p261_p10), 44   ;;  %s3913_s10 = smov (!%p261_p10), 36   ;;  %vm384_vm11 = vcmask (!%p261_p10), 64512   ;;  %vm366_vm10 = vcmask (!%p261_p10), 687104   ;;  %vm382_vm8 = vcmask (!%p261_p10), 949248  }
  0x17   : > { %vm308_vm0 = vcmp.ge.s32.totalorder (!%p261_p10), %v4055_v2, 2  ;;  %vm309_vm1 = vcmp.lt.s32.totalorder (!%p261_p10), %v4055_v2, 18  ;;  %s4560_s13 = smov (!%p261_p10), 64   ;;  %s3915_s16 = smov (!%p261_p10), 56   ;;  %v396_v18 = vadd.s32 (!%p261_p10), 128, %v4055_v2  ;;  %v397_v23 = vadd.s32 (!%p261_p10), 256, %v4055_v2 }
  0x18   : > { %vm310_vm2 = vmand (!%p261_p10), %vm308_vm0, %vm309_vm1  ;;  %s3916_s17 = smov (!%p261_p10), 116   ;;  %s3917_s18 = smov (!%p261_p10), 76   ;;  %vm380_vm1 = vcmask (!%p261_p10), 785408   ;;  %v448_v33 = vsub.s32 (!%p261_p10), 0, %v447_v26 }
  0x19   : > { %v311_v4 = vsel (!%p261_p10), %vm310_vm2, 1.0, %v3907_v3  ;;  %p296_p0 = scmp.lt.s32.totalorder (!%p261_p10), %s3892_s28, 1  ;;  %p298_p1 = scmp.lt.s32.totalorder (!%p261_p10), %s3888_s27, 1 }
  0x1a   : > { %334 = vrot.lane.b32.xlu1 %v311_v4, %s3908_s20  ;;  %313 = vrot.lane.b32.xlu0 %v311_v4, %s3909_s21  ;;  %v389_v7 = vsel %vm388_vm3, %v311_v4, 0.0  ;;  %s4558_s20 = smov 48   ;;  %s4578_s0 = sld [smem:[#allocation5_spill]] }
  0x1e   : > { %316 = vrot.lane.b32.xlu1 %v311_v4, %s3910_s22  ;;  %331 = vrot.lane.b32.xlu0 %v311_v4, %s4554_s23  ;;  %s3918_s22 = smov 8   ;;  %s3559_s23 = sshll.u32 %s3888_s27, 3 }
  0x1f   : > { %s401_s21 = ssub.s32 20, %s3559_s23 }
  0x20   : > { %p402_p13 = scmp.lt.s32.totalorder %s401_s21, 16 }
  0x22   : > { %319 = vrot.lane.b32.xlu1 %v311_v4, %s4556_s9  ;;  %337 = vrot.lane.b32.xlu0 %v311_v4, %s3913_s10  ;;  %s4562_s10 = smov 84   ;;  %s398_s9 = ssub.s32 4, %s3559_s23 }
  0x23   : > { %p399_p12 = scmp.gt.s32.totalorder %s398_s9, 0  ;;  %s4610_s21 = smov (!%p402_p13, %s401_s21), 16 }
  0x25   : > { %s4608_s9 = smov (!%p399_p12, %s398_s9), 0 }
  0x26   : > { %322 = vrot.lane.b32.xlu1 %v311_v4, %s4560_s13  ;;  %340 = vrot.lane.b32.xlu0 %v311_v4, %s3915_s16  ;;  %s3920_s16 = smov 96  }
  0x2a   : > { %349 = vrot.lane.b32.xlu1 %v311_v4, %s3916_s17  ;;  %343 = vrot.lane.b32.xlu0 %v311_v4, %s3917_s18  ;;  %s3921_s17 = smov 28   ;;  %s4564_s18 = smov 104  }
  0x2e   : > { %434 = vperm.xlu1 %3808, %v431_v5   ;;  %352 = vrot.lane.b32.xlu0 %v311_v4, %s3918_s22  ;;  %s404_s22 = smul.u32 20, %s4608_s9 }
  0x30   : > { %s405_s13 = sadd.s32 4, %s404_s22  ;;  %s4581_s22 = smov 104  }
  0x31   : > { %v406_v19 = vstv %s405_s13 }
  0x32   : > { %443 = vperm.xlu0 %3809, %v440_v6   ;;  %325 = vrot.lane.b32.xlu1 %v311_v4, %s4562_s10  ;;  %vm408_vm5 = vcmp.ge.s32.totalorder %v396_v18, %v406_v19  ;;  %vm409_vm15 = vcmp.ge.s32.totalorder %v397_v23, %v406_v19  ;;  %vm407_vm2 = vcmp.ge.s32.totalorder %v4055_v2, %v406_v19  ;;  %v3580_v19 = vld [vmem:[%s4549_s3 + $0x48] sm:$0xff] }
  0x36   : > { %346 = vrot.lane.b32.xlu1 %v311_v4, %s3920_s16  ;;  %355 = vrot.lane.b32.xlu0 %v311_v4, %s3921_s17  ;;  %s410_s16 = smul.u32 20, %s4610_s21  ;;  %s3924_s21 = smov 105  }
  0x37   : > { %s297_s17 = scalar_select %p296_p0, %s3892_s28, 1 }
  0x38   : > { %s411_s10 = sadd.s32 4, %s410_s16  ;;  %s4566_s16 = smov 88  }
  0x39   : > { %s3700_s23 = smul.u32 6, %s297_s17  ;;  %v412_v20 = vstv %s411_s10  ;;  %s3926_s17 = smov 87  }
  0x3a   : > { %328 = vrot.lane.b32.xlu1 %v311_v4, %s4564_s18  ;;  %391 = vrot.lane.b32.xlu0 %v389_v7, %s4558_s20  ;;  %s299_s20 = scalar_select %p298_p1, %s3888_s27, 1  ;;  %vm414_vm6 = vcmp.lt.s32.totalorder %v396_v18, %v412_v20  ;;  %vm415_vm0 = vcmp.lt.s32.totalorder %v397_v23, %v412_v20  ;;  %vm413_vm3 = vcmp.lt.s32.totalorder %v4055_v2, %v412_v20 }
  0x3b   : > { %vm4093_vm14 = vmand %vm408_vm5, %vm414_vm6  ;;  %vm4577_vm5 = vcmask 195584   ;;  %vm386_vm6 = vcmask 228352   ;;  %s3929_s10 = smov 68  }
  0x3c   : > { %s3699_s18 = smul.u32 3, %s299_s20  ;;  %v3561_v35 = vsel %vm4093_vm14, 1.0, %v3907_v3  ;;  %vm394_vm14 = vcmask 392192  }
  0x3e   : > { %s4089_s9 = sadd.s32 %s3700_s23, %s3699_s18  ;;  %s4568_s23 = smov 86  }
  0x3f   : > { %s3558_s13 = sshll.u32 %s4089_s9, 3  ;;  %s3928_s9 = smov 85  }
  0x40   : > { %s304_s20 = scalar_lea.vmem %s4578_s0, %s3558_s13  ;;  %s4582_s13 = smov 84  }
  0x41   : > { %v429_v45 = vld [vmem:[%s304_s20 + $0x8] sm:$0xff]  ;;  %v430_v56 = vld [vmem:[%s304_s20 + $0x10] sm:$0xff]  ;;  %v428_v60 = vld [vmem:[%s304_s20] sm:$0xff]  ;;  %s3930_s18 = smov 67   ;;  %s3931_s20 = smov 66  }
  0x8c   : > { %v314_v8 = vpop.permute.xlu0 %313  ;;  %v335_v9 = vpop.permute.xlu1 %334 }
  0x8d   : > { %v359_v31 = vsel %vm358_vm7, 0.0, %v314_v8  ;;  %vm368_vm7 = vcmask 850944  }
  0x90   : > { %v4074_v10 = vpop.permute.xlu0 %331  ;;  %v4077_v11 = vpop.permute.xlu1 %316 }
  0x91   : > { %v373_v27 = vsel %vm372_vm4, %v4074_v10, %v335_v9  ;;  %vm418_vm4 = vmand %vm409_vm15, %vm415_vm0  ;;  %v361_v37 = vsel %vm4577_vm5, %v359_v31, %v4077_v11  ;;  %vm4580_vm15 = vcmask 523264   ;;  %v3578_v11 = vld [vmem:[%s4549_s3 + $0x40] sm:$0xff]  ;;  %vm1335_vm0 = vcmask 719872  }
  0x92   : > { %v3562_v44 = vsel %vm418_vm4, 1.0, %v3907_v3  ;;  %vm1779_vm4 = vcmask 556032   ;;  %vm1868_vm5 = vcmask 547840  }
  0x94   : > { %v338_v12 = vpop.permute.xlu0 %337  ;;  %v4079_v13 = vpop.permute.xlu1 %319 }
  0x95   : > { %v375_v29 = vsel %vm374_vm9, %v373_v27, %v338_v12  ;;  %vm416_vm9 = vmand %vm407_vm2, %vm413_vm3  ;;  %vm1513_vm2 = vcmask 703488   ;;  %vm1602_vm3 = vcmask 695296  }
  0x96   : > { %v3560_v49 = vsel %vm416_vm9, 1.0, %v3907_v3  ;;  %vm2046_vm9 = vcmask 531456  }
  0x98   : > { %v341_v14 = vpop.permute.xlu0 %340  ;;  %v323_v15 = vpop.permute.xlu1 %322 }
  0x99   : > { %v377_v30 = vsel %vm376_vm12, %v375_v29, %v341_v14  ;;  %vm4579_vm12 = vcmask 359424   ;;  %v3582_v29 = vld [vmem:[%s4549_s3 + $0x50] sm:$0xff] }
  0x9a   : > { %v363_v39 = vsel %vm4579_vm12, %v361_v37, %v4079_v13  ;;  %vm631_vm12 = vcmask 1031168  }
  0x9b   : > { %v365_v41 = vsel %vm4580_vm15, %v363_v39, %v323_v15 }
  0x9c   : > { %v344_v16 = vpop.permute.xlu0 %343  ;;  %v350_v17 = vpop.permute.xlu1 %349 }
  0x9d   : > { %v379_v32 = vsel %vm378_vm13, %v377_v30, %v344_v16  ;;  %vm370_vm13 = vcmask 1014784  }
  0xa0   : > { %v353_v21 = vpop.permute.xlu0 %352 }
  0xa1   : > { %v385_v42 = vsel %vm384_vm11, %v350_v17, %v353_v21 }
  0xad   : > { %v4086_v22 = vpop.permute.xlu1 %434 }
  0xae   : > { %v438_v57 = vmul.f32 %v4086_v22, %v429_v45  ;;  %v439_v0 = vmul.f32 %v4086_v22, %v430_v56  ;;  %v437_v2 = vmul.f32 %v4086_v22, %v428_v60 }
  0xb1   : > { %v326_v24 = vpop.permute.xlu1 %325  ;;  %v444_v25 = vpop.permute.xlu0 %443 }
  0xb2   : > { %v367_v46 = vsel %vm366_vm10, %v365_v41, %v326_v24  ;;  %v2658_v24 = vld [vmem:[%s4550_s4] sm:$0xff] }
  0xb5   : > { %v347_v34 = vpop.permute.xlu1 %346  ;;  %v356_v36 = vpop.permute.xlu0 %355 }
  0xb6   : > { %v381_v38 = vsel %vm380_vm1, %v379_v32, %v347_v34  ;;  %v387_v47 = vsel %vm386_vm6, %v385_v42, %v356_v36  ;;  %vm1424_vm1 = vcmask 711680   ;;  %v3584_v34 = vld [vmem:[%s4549_s3 + $0x58] sm:$0xff]  ;;  %vm1957_vm6 = vcmask 539648  }
  0xb7   : > { %v383_v40 = vsel %vm382_vm8, %v381_v38, %v350_v17  ;;  %vm1158_vm8 = vcmask 859136  }
  0xb8   : > { %v426_v43 = vmul.f32 %v3561_v35, %v383_v40 }
  0xb9   : > { %v329_v48 = vpop.permute.xlu1 %328  ;;  %v392_v50 = vpop.permute.xlu0 %391 }
  0xba   : > { %v4123_v51 = vrot.slane %v426_v43, %v448_v33  ;;  %v369_v52 = vsel %vm368_vm7, %v367_v46, %v329_v48  ;;  %v395_v53 = vsel %vm394_vm14, %v387_v47, %v392_v50  ;;  %v3586_v43 = vld [vmem:[%s4549_s3 + $0x60] sm:$0xff]  ;;  %v3588_v48 = vld [vmem:[%s4549_s3 + $0x68] sm:$0xff] }
  0xbb   : > { %v371_v54 = vsel %vm370_vm13, %v369_v52, %v4074_v10  ;;  %v427_v55 = vmul.f32 %v3562_v44, %v395_v53 }
  0xbc   : > { %v459_v58 = vmul.f32 %v4123_v51, %v444_v25  ;;  %v425_v59 = vmul.f32 %v3560_v49, %v371_v54 }
  0xbd   : > { %v4131_v61 = vrot.slane %v427_v55, %v448_v33 }
  0xbe   : > { %v4133_v62 = vadd.f32 %v459_v58, %v438_v57  ;;  %v4135_v63 = vrot.slane %v425_v59, %v448_v33  ;;  %v3590_v57 = vld [vmem:[%s4549_s3 + $0x70] sm:$0xff] }
  0xbf   : > { %v460_v1 = vmul.f32 %v4131_v61, %v444_v25 }
  0xc0   : > { %v458_v4 = vmul.f32 %v4135_v63, %v444_v25  ;;  %1154 = vrot.lane.b32.xlu1 %v4133_v62, %s3924_s21 }
  0xc1   : > { %v4142_v5 = vadd.f32 %v460_v1, %v439_v0 }
  0xc2   : > { %v4144_v6 = vadd.f32 %v458_v4, %v437_v2 }
  0xc3   : > { %1156 = vrot.lane.b32.xlu0 %v4142_v5, %s3924_s21 }
  0xc4   : > { %1152 = vrot.lane.b32.xlu1 %v4144_v6, %s3924_s21  ;;  %s3932_s21 = smov 65  }
  0xc7   : > { %1243 = vrot.lane.b32.xlu0 %v4133_v62, %s4581_s22 }
  0xc8   : > { %1245 = vrot.lane.b32.xlu1 %v4142_v5, %s4581_s22 }
  0xcb   : > { %1333 = vrot.lane.b32.xlu0 %v4142_v5, %s4566_s16 }
  0xcc   : > { %1331 = vrot.lane.b32.xlu1 %v4133_v62, %s4566_s16 }
  0xcf   : > { %1241 = vrot.lane.b32.xlu0 %v4144_v6, %s4581_s22  ;;  %s3933_s22 = smov 127  }
  0xd0   : > { %1422 = vrot.lane.b32.xlu1 %v4142_v5, %s3926_s17 }
  0xd3   : > { %1420 = vrot.lane.b32.xlu0 %v4133_v62, %s3926_s17 }
  0xd4   : > { %1329 = vrot.lane.b32.xlu1 %v4144_v6, %s4566_s16  ;;  %s3934_s16 = smov 125  }
  0xd7   : > { %1511 = vrot.lane.b32.xlu0 %v4142_v5, %s4568_s23 }
  0xd8   : > { %1509 = vrot.lane.b32.xlu1 %v4133_v62, %s4568_s23 }
  0xdb   : > { %1598 = vrot.lane.b32.xlu0 %v4133_v62, %s3928_s9 }
  0xdc   : > { %1600 = vrot.lane.b32.xlu1 %v4142_v5, %s3928_s9 }
  0xdf   : > { %1418 = vrot.lane.b32.xlu0 %v4144_v6, %s3926_s17  ;;  %s4583_s17 = smov 64  }
  0xe0   : > { %1687 = vrot.lane.b32.xlu1 %v4133_v62, %s4582_s13 }
  0xe3   : > { %1689 = vrot.lane.b32.xlu0 %v4142_v5, %s4582_s13 }
  0xe4   : > { %1507 = vrot.lane.b32.xlu1 %v4144_v6, %s4568_s23  ;;  %s3935_s23 = smov 126  }
  0xe7   : > { %1775 = vrot.lane.b32.xlu0 %v4133_v62, %s3929_s10 }
  0xe8   : > { %1777 = vrot.lane.b32.xlu1 %v4142_v5, %s3929_s10 }
  0xeb   : > { %1866 = vrot.lane.b32.xlu0 %v4142_v5, %s3930_s18 }
  0xec   : > { %1864 = vrot.lane.b32.xlu1 %v4133_v62, %s3930_s18 }
  0xef   : > { %1596 = vrot.lane.b32.xlu0 %v4144_v6, %s3928_s9  ;;  %s4584_s9 = smov 48  }
  0xf0   : > { %1955 = vrot.lane.b32.xlu1 %v4142_v5, %s3931_s20 }
  0xf3   : > { %1953 = vrot.lane.b32.xlu0 %v4133_v62, %s3931_s20 }
  0xf4   : > { %1685 = vrot.lane.b32.xlu1 %v4144_v6, %s4582_s13 }
  0xf7   : > { %2044 = vrot.lane.b32.xlu0 %v4142_v5, %s3932_s21 }
  0xf8   : > { %471 = vrot.lane.b32.xlu1 %v4133_v62, %s3933_s22 }
  0xfb   : > { %2131 = vrot.lane.b32.xlu0 %v4133_v62, %s4583_s17 }
  0xfc   : > { %2042 = vrot.lane.b32.xlu1 %v4133_v62, %s3932_s21 }
  0xff   : > { %1773 = vrot.lane.b32.xlu0 %v4144_v6, %s3929_s10  ;;  %s3936_s10 = smov 47  }
 0x100   : > { %2133 = vrot.lane.b32.xlu1 %v4142_v5, %s4583_s17 }
 0x103   : > { %2221 = vrot.lane.b32.xlu0 %v4142_v5, %s4584_s9 }
 0x104   : > { %1862 = vrot.lane.b32.xlu1 %v4144_v6, %s3930_s18  ;;  %s4585_s18 = smov 124  }
 0x107   : > { %715 = vrot.lane.b32.xlu0 %v4133_v62, %s3934_s16 }
 0x108   : > { %629 = vrot.lane.b32.xlu1 %v4133_v62, %s3935_s23 }
 0x10b   : > { %469 = vrot.lane.b32.xlu0 %v4144_v6, %s3933_s22  ;;  %s3937_s22 = smov 108  }
 0x10c   : > { %2219 = vrot.lane.b32.xlu1 %v4133_v62, %s4584_s9 }
 0x10f   : > { %1951 = vrot.lane.b32.xlu0 %v4144_v6, %s3931_s20  ;;  %s4570_s20 = smov 46  }
 0x110   : > { %2309 = vrot.lane.b32.xlu1 %v4142_v5, %s3936_s10 }
 0x113   : > { %2307 = vrot.lane.b32.xlu0 %v4133_v62, %s3936_s10 }
 0x114   : > { %2040 = vrot.lane.b32.xlu1 %v4144_v6, %s3932_s21  ;;  %s3940_s21 = smov 45  }
 0x117   : > { %627 = vrot.lane.b32.xlu0 %v4144_v6, %s3935_s23 }
 0x118   : > { %801 = vrot.lane.b32.xlu1 %v4133_v62, %s4585_s18 }
 0x11b   : > { %2129 = vrot.lane.b32.xlu0 %v4144_v6, %s4583_s17 }
 0x11c   : > { %887 = vrot.lane.b32.xlu1 %v4133_v62, %s3937_s22 }
 0x11f   : > { %799 = vrot.lane.b32.xlu0 %v4144_v6, %s4585_s18 }
 0x120   : > { %713 = vrot.lane.b32.xlu1 %v4144_v6, %s3934_s16  ;;  %s3939_s16 = smov 107  }
 0x123   : > { %2305 = vrot.lane.b32.xlu0 %v4144_v6, %s3936_s10  ;;  %s4591_s10 = smov 88  }
 0x124   : > { %2217 = vrot.lane.b32.xlu1 %v4144_v6, %s4584_s9 }
 0x127   : > { %889 = vrot.lane.b32.xlu0 %v4142_v5, %s3937_s22 }
 0x128   : > { %2396 = vrot.lane.b32.xlu1 %v4133_v62, %s4570_s20 }
 0x12b   : > { %2398 = vrot.lane.b32.xlu0 %v4142_v5, %s4570_s20 }
 0x12c   : > { %885 = vrot.lane.b32.xlu1 %v4144_v6, %s3937_s22  ;;  %s3941_s22 = smov 106  }
 0x12f   : > { %2394 = vrot.lane.b32.xlu0 %v4144_v6, %s4570_s20  ;;  %s4587_s20 = smov 86  }
 0x130   : > { %976 = vrot.lane.b32.xlu1 %v4133_v62, %s3939_s16 }
 0x132   : > { %v1155_v7 = vpop.permute.xlu1 %1154 }
 0x133   : > { %978 = vrot.lane.b32.xlu0 %v4142_v5, %s3939_s16 }
 0x134   : > { %2485 = vrot.lane.b32.xlu1 %v4133_v62, %s3940_s21 }
 0x135   : > { %v1157_v8 = vpop.permute.xlu0 %1156 }
 0x136   : > { %v1153_v9 = vpop.permute.xlu1 %1152  ;;  %v1160_v10 = vsel %vm1158_vm8, %v1155_v7, %v1157_v8 }
 0x137   : > { %1166 = vmatprep.subr.mxu0 %v1160_v10  ;;  %2487 = vrot.lane.b32.xlu0 %v4142_v5, %s3940_s21  ;;  %v1159_v12 = vsel %vm1158_vm8, %v1153_v9, %v1155_v7  ;;  %v3594_v10 = vld [vmem:[%s4549_s3 + $0x80] sm:$0xff]  ;;  %vm4588_vm8 = vmmov %vm4580_vm15 }
 0x138   : > { %974 = vrot.lane.b32.xlu1 %v4144_v6, %s3939_s16  ;;  %1167 = vmatpush1.msra.mxu0 %v1159_v12  ;;  %s4586_s16 = smov 44  }
 0x139   : > { %v1244_v13 = vpop.permute.xlu0 %1243  ;;  %3579 = vmatmul.mubr.msk.f32.vlgmr.msra.gmra.mrb[0].mxu0 %vm384_vm11, %v3578_v11 }
 0x13a   : > { %v1246_v14 = vpop.permute.xlu1 %1245  ;;  %1318 = vmatprep.mubr.f32.mxu0 %v3907_v3 }
 0x13b   : > { %2483 = vrot.lane.b32.xlu0 %v4144_v6, %s3940_s21  ;;  %v1248_v15 = vsel %vm368_vm7, %v1244_v13, %v1246_v14 }
 0x13c   : > { %1065 = vrot.lane.b32.xlu1 %v4133_v62, %s3941_s22  ;;  %1254 = vmatprep.subr.mxu0 %v1248_v15 }
 0x13d   : > { %v1334_v16 = vpop.permute.xlu0 %1333 }
 0x13e   : > { %v1332_v17 = vpop.permute.xlu1 %1331 }
 0x13f   : > { %1067 = vrot.lane.b32.xlu0 %v4142_v5, %s3941_s22  ;;  %v1337_v22 = vsel %vm1335_vm0, %v1332_v17, %v1334_v16 }
 0x140   : > { %2574 = vrot.lane.b32.xlu1 %v4133_v62, %s4586_s16 }
 0x141   : > { %v1242_v18 = vpop.permute.xlu0 %1241 }
 0x142   : > { %v1247_v20 = vsel %vm368_vm7, %v1242_v18, %v1244_v13  ;;  %v1423_v21 = vpop.permute.xlu1 %1422  ;;  %vm473_vm7 = vcmask 1039360   ;;  %v3563_v13 = vld [vmem:[%s4549_s3 + $0x8] sm:$0xff] }
 0x143   : > { %2576 = vrot.lane.b32.xlu0 %v4142_v5, %s4586_s16  ;;  %1255 = vmatpush1.msra.mxu0 %v1247_v20 }
 0x144   : > { %1063 = vrot.lane.b32.xlu1 %v4144_v6, %s3941_s22  ;;  %3581 = vmatmul.mubr.msk.f32.vlgmr.msra.gmra.mrb[0].mxu0 %vm384_vm11, %v3580_v19 }
 0x145   : > { %1343 = vmatprep.subr.mxu0 %v1337_v22  ;;  %v1421_v23 = vpop.permute.xlu0 %1420  ;;  %1407 = vmatprep.mubr.f32.mxu0 %v3907_v3 }
 0x146   : > { %v1330_v25 = vpop.permute.xlu1 %1329  ;;  %v1426_v27 = vsel %vm1424_vm1, %v1421_v23, %v1423_v21 }
 0x147   : > { %v1336_v26 = vsel %vm1335_vm0, %v1330_v25, %v1332_v17  ;;  %2572 = vrot.lane.b32.xlu0 %v4144_v6, %s4586_s16  ;;  %v3596_v17 = vld [vmem:[%s4549_s3 + $0x88] sm:$0xff]  ;;  %v3598_v25 = vld [vmem:[%s4549_s3 + $0x90] sm:$0xff] }
 0x148   : > { %2661 = vperm.xlu1 %3808, %v2658_v24   ;;  %1344 = vmatpush1.msra.mxu0 %v1336_v26 }
 0x149   : > { %v1512_v28 = vpop.permute.xlu0 %1511  ;;  %1432 = vmatprep.subr.mxu0 %v1426_v27 }
 0x14a   : > { %v1510_v30 = vpop.permute.xlu1 %1509 }
 0x14b   : > { %2675 = vrot.lane.b32.xlu0 %v4135_v63, %s4587_s20  ;;  %v1515_v37 = vsel %vm1513_vm2, %v1510_v30, %v1512_v28  ;;  %v3592_v63 = vld [vmem:[%s4549_s3 + $0x78] sm:$0xff] }
 0x14c   : > { %2677 = vrot.lane.b32.xlu1 %v4123_v51, %s4587_s20  ;;  %3583 = vmatmul.mubr.msk.f32.vlgmr.msra.gmra.mrb[0].mxu0 %vm384_vm11, %v3582_v29  ;;  %v3566_v29 = vld [vmem:[%s4549_s3 + $0x10] sm:$0xff] }
 0x14d   : > { %v1599_v31 = vpop.permute.xlu0 %1598  ;;  %1496 = vmatprep.mubr.f32.mxu0 %v3907_v3 }
 0x14e   : > { %v1601_v32 = vpop.permute.xlu1 %1600 }
 0x14f   : > { %2679 = vrot.lane.b32.xlu0 %v4131_v61, %s4587_s20  ;;  %v1604_v41 = vsel %vm1602_vm3, %v1599_v31, %v1601_v32 }
 0x151   : > { %v1419_v33 = vpop.permute.xlu0 %1418 }
 0x152   : > { %v1425_v35 = vsel %vm1424_vm1, %v1419_v33, %v1421_v23  ;;  %v1688_v36 = vpop.permute.xlu1 %1687  ;;  %vm717_vm1 = vcmask 1022976  }
 0x153   : > { %1433 = vmatpush1.msra.mxu0 %v1425_v35 }
 0x154   : > { %3585 = vmatmul.mubr.msk.f32.vlgmr.msra.gmra.mrb[0].mxu0 %vm384_vm11, %v3584_v34  ;;  %1521 = vmatprep.subr.mxu0 %v1515_v37  ;;  %v3600_v34 = vld [vmem:[%s4549_s3 + $0x98] sm:$0xff] }
 0x155   : > { %v1690_v38 = vpop.permute.xlu0 %1689  ;;  %1585 = vmatprep.mubr.f32.mxu0 %v3907_v3 }
 0x156   : > { %v1508_v39 = vpop.permute.xlu1 %1507  ;;  %v1692_v51 = vsel %vm366_vm10, %v1688_v36, %v1690_v38  ;;  %v3568_v38 = vld [vmem:[%s4549_s3 + $0x18] sm:$0xff] }
 0x157   : > { %v1514_v40 = vsel %vm1513_vm2, %v1508_v39, %v1510_v30 }
 0x158   : > { %1522 = vmatpush1.msra.mxu0 %v1514_v40 }
 0x159   : > { %v1776_v42 = vpop.permute.xlu0 %1775  ;;  %1610 = vmatprep.subr.mxu0 %v1604_v41 }
 0x15a   : > { %v1778_v44 = vpop.permute.xlu1 %1777 }
 0x15b   : > { %v1781_v55 = vsel %vm1779_vm4, %v1776_v42, %v1778_v44  ;;  %v3602_v44 = vld [vmem:[%s4549_s3 + $0xa0] sm:$0xff] }
 0x15c   : > { %3587 = vmatmul.mubr.msk.f32.vlgmr.msra.gmra.mrb[0].mxu0 %vm384_vm11, %v3586_v43 }
 0x15d   : > { %v1867_v45 = vpop.permute.xlu0 %1866  ;;  %1674 = vmatprep.mubr.f32.mxu0 %v3907_v3 }
 0x15e   : > { %v1865_v46 = vpop.permute.xlu1 %1864 }
 0x15f   : > { %v1870_v2 = vsel %vm1868_vm5, %v1865_v46, %v1867_v45 }
 0x161   : > { %v1597_v47 = vpop.permute.xlu0 %1596 }
 0x162   : > { %v1603_v49 = vsel %vm1602_vm3, %v1597_v47, %v1599_v31  ;;  %v1956_v50 = vpop.permute.xlu1 %1955  ;;  %vm2311_vm3 = vcmask 384000  }
 0x163   : > { %1611 = vmatpush1.msra.mxu0 %v1603_v49  ;;  %v3570_v49 = vld [vmem:[%s4549_s3 + $0x20] sm:$0xff] }
 0x164   : > { %3589 = vmatmul.mubr.msk.f32.vlgmr.msra.gmra.mrb[0].mxu0 %vm384_vm11, %v3588_v48  ;;  %1698 = vmatprep.subr.mxu0 %v1692_v51 }
 0x165   : > { %v1954_v52 = vpop.permute.xlu0 %1953  ;;  %1762 = vmatprep.mubr.f32.mxu0 %v3907_v3 }
 0x166   : > { %v1686_v53 = vpop.permute.xlu1 %1685  ;;  %v1959_v8 = vsel %vm1957_vm6, %v1954_v52, %v1956_v50 }
 0x167   : > { %v1691_v54 = vsel %vm366_vm10, %v1686_v53, %v1688_v36 }
 0x168   : > { %1699 = vmatpush1.msra.mxu0 %v1691_v54  ;;  %v3604_v54 = vld [vmem:[%s4549_s3 + $0xa8] sm:$0xff] }
 0x169   : > { %v2045_v56 = vpop.permute.xlu0 %2044  ;;  %1787 = vmatprep.subr.mxu0 %v1781_v55 }
 0x16a   : > { %v472_v58 = vpop.permute.xlu1 %471 }
 0x16b   : > { %480 = vmatprep.subr.mxu1 %v472_v58 }
 0x16c   : > { %3591 = vmatmul.mubr.msk.f32.vlgmr.msra.gmra.mrb[0].mxu0 %vm384_vm11, %v3590_v57 }
 0x16d   : > { %v4297_v59 = vpop.permute.xlu0 %2131  ;;  %1851 = vmatprep.mubr.f32.mxu0 %v3907_v3 }
 0x16e   : > { %v2043_v60 = vpop.permute.xlu1 %2042 }
 0x16f   : > { %v2048_v20 = vsel %vm2046_vm9, %v2043_v60, %v2045_v56 }
 0x171   : > { %v1774_v61 = vpop.permute.xlu0 %1773 }
 0x172   : > { %v1780_v0 = vsel %vm1779_vm4, %v1774_v61, %v1776_v42  ;;  %v2134_v1 = vpop.permute.xlu1 %2133  ;;  %vm891_vm4 = vcmask 883712  }
 0x173   : > { %1788 = vmatpush1.msra.mxu0 %v1780_v0  ;;  %v2136_v23 = vsel %vm4580_vm15, %v4297_v59, %v2134_v1  ;;  %vm4589_vm15 = vcmask 359424  }
 0x174   : > { %3593 = vmatmul.mubr.msk.f32.vlgmr.msra.gmra.mrb[0].mxu0 %vm384_vm11, %v3592_v63  ;;  %1876 = vmatprep.subr.mxu0 %v1870_v2  ;;  %v3606_v63 = vld [vmem:[%s4549_s3 + $0xb0] sm:$0xff] }
 0x175   : > { %v2222_v4 = vpop.permute.xlu0 %2221  ;;  %1940 = vmatprep.mubr.f32.mxu0 %v3907_v3 }
 0x176   : > { %v1863_v5 = vpop.permute.xlu1 %1862 }
 0x177   : > { %v1869_v7 = vsel %vm1868_vm5, %v1863_v5, %v1865_v46  ;;  %vm2400_vm5 = vcmask 375808   ;;  %v3574_v5 = vld [vmem:[%s4549_s3 + $0x30] sm:$0xff] }
 0x178   : > { %1877 = vmatpush1.msra.mxu0 %v1869_v7 }
 0x179   : > { %v716_v9 = vpop.permute.xlu0 %715  ;;  %1965 = vmatprep.subr.mxu0 %v1959_v8 }
 0x17a   : > { %v630_v11 = vpop.permute.xlu1 %629 }
 0x17c   : > { %3595 = vmatmul.mubr.msk.f32.vlgmr.msra.gmra.mrb[0].mxu0 %vm384_vm11, %v3594_v10  ;;  %v3608_v10 = vld [vmem:[%s4549_s3 + $0xb8] sm:$0xff] }
 0x17d   : > { %v470_v12 = vpop.permute.xlu0 %469  ;;  %2029 = vmatprep.mubr.f32.mxu0 %v3907_v3 }
 0x17e   : > { %v2220_v14 = vpop.permute.xlu1 %2219  ;;  %v474_v15 = vsel %vm473_vm7, %v470_v12, %v472_v58  ;;  %v3572_v58 = vld [vmem:[%s4549_s3 + $0x28] sm:$0xff]  ;;  %vm2489_vm7 = vcmask 367616  }
 0x17f   : > { %481 = vmatpush1.msra.mxu1 %v474_v15  ;;  %v2224_v32 = vsel %vm394_vm14, %v2220_v14, %v2222_v4 }
 0x180   : > { %3564 = vmatmul.mubr.msk.f32.vlgmr.msra.gmra.mrb[0].mxu1 %vm384_vm11, %v3563_v13  ;;  %554 = vmatprep.subr.mxu1 %v4133_v62 }
 0x181   : > { %v1952_v16 = vpop.permute.xlu0 %1951  ;;  %555 = vmatpush1.msra.mxu1 %v4144_v6  ;;  %618 = vmatprep.mubr.f32.mxu1 %v3907_v3  ;;  %v464_v6 = vld [vmem:[%s4549_s3] sm:$0xff] }
 0x182   : > { %v1958_v18 = vsel %vm1957_vm6, %v1952_v16, %v1954_v52  ;;  %638 = vmatprep.subr.mxu1 %v630_v11  ;;  %v2310_v19 = vpop.permute.xlu1 %2309  ;;  %vm980_vm6 = vcmask 875520   ;;  %v3576_v16 = vld [vmem:[%s4549_s3 + $0x38] sm:$0xff] }
 0x183   : > { %1966 = vmatpush1.msra.mxu0 %v1958_v18 }
 0x184   : > { %3597 = vmatmul.mubr.msk.f32.vlgmr.msra.gmra.mrb[0].mxu0 %vm384_vm11, %v3596_v17  ;;  %2054 = vmatprep.subr.mxu0 %v2048_v20 }
 0x185   : > { %v2308_v62 = vpop.permute.xlu0 %2307  ;;  %2118 = vmatprep.mubr.f32.mxu0 %v3907_v3 }
 0x186   : > { %v2041_v21 = vpop.permute.xlu1 %2040  ;;  %v2313_v42 = vsel %vm2311_vm3, %v2308_v62, %v2310_v19  ;;  %v3610_v19 = vld [vmem:[%s4549_s3 + $0xc0] sm:$0xff] }
 0x187   : > { %v2047_v22 = vsel %vm2046_vm9, %v2041_v21, %v2043_v60  ;;  %vm1069_vm9 = vcmask 867328  }
 0x188   : > { %3565 = vmatmul.mubr.msk.f32.vlgmr.msra.gmra.mrb[0].mxu1 %vm384_vm11, %v464_v6  ;;  %2055 = vmatpush1.msra.mxu0 %v2047_v22 }
 0x189   : > { %v628_v24 = vpop.permute.xlu0 %627  ;;  %2142 = vmatprep.subr.mxu0 %v2136_v23  ;;  %702 = vmatprep.mubr.f32.mxu1 %v3907_v3 }
 0x18a   : > { %v632_v26 = vsel %vm631_vm12, %v628_v24, %v630_v11  ;;  %v802_v27 = vpop.permute.xlu1 %801 }
 0x18b   : > { %639 = vmatpush1.msra.mxu1 %v632_v26 }
 0x18c   : > { %724 = vmatprep.subr.mxu1 %v716_v9  ;;  %3599 = vmatmul.mubr.msk.f32.vlgmr.msra.gmra.mrb[0].mxu0 %vm384_vm11, %v3598_v25 }
 0x18d   : > { %v2130_v28 = vpop.permute.xlu0 %2129  ;;  %2206 = vmatprep.mubr.f32.mxu0 %v3907_v3 }
 0x18e   : > { %v2135_v30 = vsel %vm4588_vm8, %v2130_v28, %v4297_v59  ;;  %v888_v31 = vpop.permute.xlu1 %887  ;;  %vm4590_vm8 = vmmov %vm4589_vm15 }
 0x18f   : > { %2143 = vmatpush1.msra.mxu0 %v2135_v30 }
 0x190   : > { %3567 = vmatmul.mubr.msk.f32.vlgmr.msra.gmra.mrb[0].mxu1 %vm384_vm11, %v3566_v29  ;;  %2230 = vmatprep.subr.mxu0 %v2224_v32 }
 0x191   : > { %v800_v33 = vpop.permute.xlu0 %799  ;;  %788 = vmatprep.mubr.f32.mxu1 %v3907_v3 }
 0x192   : > { %v714_v35 = vpop.permute.xlu1 %713  ;;  %v803_v41 = vsel %vm370_vm13, %v800_v33, %v802_v27 }
 0x193   : > { %v718_v36 = vsel %vm717_vm1, %v714_v35, %v716_v9 }
 0x194   : > { %725 = vmatpush1.msra.mxu1 %v718_v36  ;;  %3601 = vmatmul.mubr.msk.f32.vlgmr.msra.gmra.mrb[0].mxu0 %vm384_vm11, %v3600_v34 }
 0x195   : > { %v2306_v37 = vpop.permute.xlu0 %2305  ;;  %809 = vmatprep.subr.mxu1 %v802_v27  ;;  %2294 = vmatprep.mubr.f32.mxu0 %v3907_v3 }
 0x196   : > { %v2218_v39 = vpop.permute.xlu1 %2217  ;;  %v2312_v47 = vsel %vm2311_vm3, %v2306_v37, %v2308_v62 }
 0x197   : > { %v2223_v40 = vsel %vm394_vm14, %v2218_v39, %v2220_v14  ;;  %v3442_v39 = vld [vmem:[%s4552_s6] sm:$0xff] }
 0x198   : > { %3569 = vmatmul.mubr.msk.f32.vlgmr.msra.gmra.mrb[0].mxu1 %vm384_vm11, %v3568_v38  ;;  %2231 = vmatpush1.msra.mxu0 %v2223_v40 }
 0x199   : > { %810 = vmatpush1.msra.mxu1 %v803_v41  ;;  %v890_v43 = vpop.permute.xlu0 %889  ;;  %2319 = vmatprep.subr.mxu0 %v2313_v42  ;;  %v3612_v42 = vld [vmem:[%s4551_s5 + $0x8] sm:$0xff] }
 0x19a   : > { %v2397_v45 = vpop.permute.xlu1 %2396  ;;  %v893_v46 = vsel %vm891_vm4, %v888_v31, %v890_v43  ;;  %873 = vmatprep.mubr.f32.mxu1 %v3907_v3 }
 0x19b   : > { %899 = vmatprep.subr.mxu1 %v893_v46  ;;  %v2687_v46 = vld [vmem:[%s4551_s5] sm:$0xff] }
 0x19c   : > { %3603 = vmatmul.mubr.msk.f32.vlgmr.msra.gmra.mrb[0].mxu0 %vm384_vm11, %v3602_v44 }
 0x19d   : > { %2320 = vmatpush1.msra.mxu0 %v2312_v47  ;;  %v2399_v48 = vpop.permute.xlu0 %2398  ;;  %2383 = vmatprep.mubr.f32.mxu0 %v3907_v3 }
 0x19e   : > { %v886_v50 = vpop.permute.xlu1 %885  ;;  %v2402_v51 = vsel %vm2400_vm5, %v2397_v45, %v2399_v48 }
 0x19f   : > { %v892_v52 = vsel %vm891_vm4, %v886_v50, %v888_v31  ;;  %2408 = vmatprep.subr.mxu0 %v2402_v51  ;;  %v3615_v50 = vld [vmem:[%s4551_s5 + $0x10] sm:$0xff] }
 0x1a0   : > { %3571 = vmatmul.mubr.msk.f32.vlgmr.msra.gmra.mrb[0].mxu1 %vm384_vm11, %v3570_v49 }
 0x1a1   : > { %900 = vmatpush1.msra.mxu1 %v892_v52  ;;  %v2395_v53 = vpop.permute.xlu0 %2394  ;;  %963 = vmatprep.mubr.f32.mxu1 %v3907_v3 }
 0x1a2   : > { %v2401_v55 = vsel %vm2400_vm5, %v2395_v53, %v2397_v45  ;;  %v977_v56 = vpop.permute.xlu1 %976 }
 0x1a4   : > { %3605 = vmatmul.mubr.msk.f32.vlgmr.msra.gmra.mrb[0].mxu0 %vm384_vm11, %v3604_v54  ;;  %v3617_v54 = vld [vmem:[%s4551_s5 + $0x18] sm:$0xff] }
 0x1a5   : > { %2409 = vmatpush1.msra.mxu0 %v2401_v55  ;;  %v979_v57 = vpop.permute.xlu0 %978  ;;  %2472 = vmatprep.mubr.f32.mxu0 %v3907_v3 }
 0x1a6   : > { %v2486_v59 = vpop.permute.xlu1 %2485  ;;  %v982_v60 = vsel %vm980_vm6, %v977_v56, %v979_v57 }
 0x1a7   : > { %988 = vmatprep.subr.mxu1 %v982_v60 }
 0x1a8   : > { %3573 = vmatmul.mubr.msk.f32.vlgmr.msra.gmra.mrb[0].mxu1 %vm384_vm11, %v3572_v58  ;;  %v3619_v58 = vld [vmem:[%s4551_s5 + $0x20] sm:$0xff] }
 0x1a9   : > { %v2488_v61 = vpop.permute.xlu0 %2487  ;;  %1052 = vmatprep.mubr.f32.mxu1 %v3907_v3 }
 0x1aa   : > { %v975_v0 = vpop.permute.xlu1 %974  ;;  %v2491_v1 = vsel %vm2489_vm7, %v2486_v59, %v2488_v61 }
 0x1ab   : > { %v981_v2 = vsel %vm980_vm6, %v975_v0, %v977_v56  ;;  %2497 = vmatprep.subr.mxu0 %v2491_v1 }
 0x1ac   : > { %989 = vmatpush1.msra.mxu1 %v981_v2  ;;  %3607 = vmatmul.mubr.msk.f32.vlgmr.msra.gmra.mrb[0].mxu0 %vm384_vm11, %v3606_v63  ;;  %v3621_v63 = vld [vmem:[%s4551_s5 + $0x28] sm:$0xff] }
 0x1ad   : > { %v2484_v4 = vpop.permute.xlu0 %2483  ;;  %2561 = vmatprep.mubr.f32.mxu0 %v3907_v3 }
 0x1ae   : > { %v2490_v7 = vsel %vm2489_vm7, %v2484_v4, %v2486_v59  ;;  %v1066_v8 = vpop.permute.xlu1 %1065  ;;  %v3623_v4 = vld [vmem:[%s4551_s5 + $0x30] sm:$0xff] }
 0x1af   : > { %2498 = vmatpush1.msra.mxu0 %v2490_v7 }
 0x1b0   : > { %3575 = vmatmul.mubr.msk.f32.vlgmr.msra.gmra.mrb[0].mxu1 %vm384_vm11, %v3574_v5 }
 0x1b1   : > { %v1068_v9 = vpop.permute.xlu0 %1067  ;;  %1141 = vmatprep.mubr.f32.mxu1 %v3907_v3 }
 0x1b2   : > { %v2575_v11 = vpop.permute.xlu1 %2574  ;;  %v1071_v12 = vsel %vm1069_vm9, %v1066_v8, %v1068_v9  ;;  %v3625_v9 = vld [vmem:[%s4551_s5 + $0x38] sm:$0xff] }
 0x1b3   : > { %1077 = vmatprep.subr.mxu1 %v1071_v12 }
 0x1b4   : > { %3609 = vmatmul.mubr.msk.f32.vlgmr.msra.gmra.mrb[0].mxu0 %vm384_vm11, %v3608_v10 }
 0x1b5   : > { %v2577_v13 = vpop.permute.xlu0 %2576  ;;  %2649 = vmatprep.mubr.f32.mxu0 %v3907_v3 }
 0x1b6   : > { %v1064_v14 = vpop.permute.xlu1 %1063  ;;  %v2579_v15 = vsel %vm4589_vm15, %v2575_v11, %v2577_v13 }
 0x1b7   : > { %v1070_v17 = vsel %vm1069_vm9, %v1064_v14, %v1066_v8  ;;  %2585 = vmatprep.subr.mxu0 %v2579_v15 }
 0x1b8   : > { %1078 = vmatpush1.msra.mxu1 %v1070_v17 }
 0x1b9   : > { %v2573_v18 = vpop.permute.xlu0 %2572  ;;  %3577 = vmatmul.mubr.msk.f32.vlgmr.msra.gmra.mrb[0].mxu1 %vm384_vm11, %v3576_v16 }
 0x1ba   : > { %v2578_v20 = vsel %vm4590_vm8, %v2573_v18, %v2575_v11  ;;  %2766 = vmatprep.mubr.f32.mxu1 %v3907_v3  ;;  %v3627_v11 = vld [vmem:[%s4551_s5 + $0x40] sm:$0xff] }
 0x1bb   : > { %2586 = vmatpush1.msra.mxu0 %v2578_v20 }
 0x1bc   : > { %3611 = vmatmul.mubr.msk.f32.vlgmr.msra.gmra.mrb[0].mxu0 %vm384_vm11, %v3610_v19 }
 0x1bd   : > { %v2676_v23 = vpop.permute.xlu0 %2675 }
 0x1c1   : > { %v2680_v32 = vpop.permute.xlu0 %2679 }
 0x1c7   : > { %v2662_v6 = vpop.permute.xlu1 %2661 }
 0x1cb   : > { %v2678_v28 = vpop.permute.xlu1 %2677 }
 0x1cc   : > { %v2681_v33 = vsel %vm1513_vm2, %v2676_v23, %v2678_v28  ;;  %v2682_v35 = vsel %vm1513_vm2, %v2678_v28, %v2680_v32 }
 0x28c   : > { %v1143_v62 = vpop.f32.mrb[0].mxu1 }
 0x28d   : > { %v1145_v21 = vpop.f32.mrb[1].mxu1 }
 0x28f   : > { %v2651_v22 = vpop.f32.mrb[0].mxu0 }
 0x290   : > { %v3635_v24 = vadd.f32 %v2651_v22, %v1143_v62  ;;  %v2653_v25 = vpop.f32.mrb[1].mxu0 }
 0x291   : > { %v3636_v26 = vadd.f32 %v2653_v25, %v1145_v21 }
 0x292   : > { %v2664_v27 = vadd.f32 %v3635_v24, %v2662_v6 }
 0x293   : > { %v2665_v29 = vadd.f32 %v3636_v26, %v2662_v6 }
 0x294   : > { %vm2666_vm1 = vcmp.gt.f32.partialorder %v2664_v27, 0.0  ;;  %v2668_v30 = vmul.f32 0.01, %v2664_v27 }
 0x295   : > { %vm2667_vm3 = vcmp.gt.f32.partialorder %v2665_v29, 0.0  ;;  %v2669_v31 = vmul.f32 0.01, %v2665_v29 }
 0x296   : > { %v2670_v34 = vsel %vm2666_vm1, %v2664_v27, %v2668_v30 }
 0x297   : > { %v2685_v36 = vmul.f32 %v2681_v33, %v2670_v34  ;;  %v2671_v37 = vsel %vm2667_vm3, %v2665_v29, %v2669_v31 }
 0x298   : > { %v2686_v38 = vmul.f32 %v2682_v35, %v2671_v37 }
 0x299   : > { %2692 = vrot.lane.b32.xlu1 %v2685_v36, %s3935_s23 }
 0x29a   : > { %2694 = vrot.lane.b32.xlu0 %v2686_v38, %s3935_s23  ;;  %s4592_s23 = smov 46  }
 0x29d   : > { %2849 = vrot.lane.b32.xlu1 %v2685_v36, %s4585_s18 }
 0x29e   : > { %2851 = vrot.lane.b32.xlu0 %v2686_v38, %s4585_s18  ;;  %s293_s18 = sand.u32 1, %s3880_s25  }
 0x29f   : > { %s3557_s21 = sshll.u32 %s293_s18, 4 }
 0x2a0   : > { %s295_s22 = scalar_lea.vmem [#allocation2], %s3557_s21  ;;  %s3942_s21 = smov [#allocation2]  }
 0x2a1   : > { %2934 = vrot.lane.b32.xlu1 %v2685_v36, %s4591_s10  ;;  %s3470_s17 = sshll.u32 %s295_s22, 4  ;;  %s4495_s17 = int_to_ptr.vmem [resolvable:$true] %s3470_s17 }
 0x2a2   : > { %2936 = vrot.lane.b32.xlu0 %v2686_v38, %s4591_s10 }
 0x2a5   : > { %3019 = vrot.lane.b32.xlu1 %v2685_v36, %s4587_s20 }
 0x2a6   : > { %3021 = vrot.lane.b32.xlu0 %v2686_v38, %s4587_s20  ;;  %s3631_s20 = sshll.u32 %s3892_s28, 2  ;;  %s3810_s28 = scalar_lea.vmem %s4495_s17, 256 }
 0x2a7   : > { %p3811_p2 = scmp.ne.s32.totalorder %s4495_s17, %s3810_s28 }
 0x2a9   : > { %3104 = vrot.lane.b32.xlu1 %v2685_v36, %s4582_s13  ;;  %p3812_p4 = pnand %p3811_p2, %p4034_p3 }
 0x2aa   : > { %3106 = vrot.lane.b32.xlu0 %v2686_v38, %s4582_s13  ;;  %s3630_s13 = sshll.u32 %s3888_s27, 1  ;;  %s3454_s27 = scalar_lea.sflag [#allocation3], %s293_s18 }
 0x2ab   : > { %p3813_p5 = pneg %p3812_p4 }
 0x2ad   : > { %3189 = vrot.lane.b32.xlu1 %v2685_v36, %s4584_s9 }
 0x2ae   : > { %3191 = vrot.lane.b32.xlu0 %v2686_v38, %s4584_s9  ;;  %s3466_s9 = sadd.s32 %s3631_s20, %s3630_s13  ;;  %s3814_s13 = sshll.u32 %s3942_s21, 4  ;;  %s3815_s13 = int_to_ptr.vmem [resolvable:$false] %s3814_s13 }
 0x2af   : > { %s3816_s20 = scalar_lea.vmem %s3815_s13, 512  ;;  %p3817_p6 = scmp.lt.s32.totalorder %s4495_s17, %s3815_s13 }
 0x2b0   : > { %p3818_p7 = scmp.lt.s32.totalorder %s3816_s20, %s3810_s28 }
 0x2b1   : > { %3274 = vrot.lane.b32.xlu1 %v2685_v36, %s4592_s23 }
 0x2b2   : > { %3276 = vrot.lane.b32.xlu0 %v2686_v38, %s4592_s23  ;;  %p3819_p9 = por %p3818_p7, %p3817_p6 }
 0x2b4   : > { %p3820_p10 = pnand %p3819_p9, %p3813_p5 }
 0x2b5   : > { %3359 = vrot.lane.b32.xlu1 %v2685_v36, %s4586_s16 }
 0x2b6   : > { %3361 = vrot.lane.b32.xlu0 %v2686_v38, %s4586_s16  ;;  %s3632_s16 = sshll.u32 %s3466_s9, 7 }
 0x2b7   : > { %s4493_s23 = scalar_lea.hbm %s4553_s7, %s3632_s16 }
 0x2b9   : > { %3445 = vperm.xlu1 %3808, %v3442_v39  }
 0x30b   : > { %v2693_v40 = vpop.permute.xlu1 %2692 }
 0x30c   : > { %v2695_v41 = vpop.permute.xlu0 %2694 }
 0x30d   : > { %v2696_v43 = vsel %vm631_vm12, %v2693_v40, %v2695_v41  ;;  %2702 = vmatprep.subr.mxu1 %v2695_v41 }
 0x30e   : > { %2703 = vmatpush1.msra.mxu1 %v2696_v43 }
 0x30f   : > { %3613 = vmatmul.mubr.msk.f32.vlgmr.msra.gmra.mrb[2].mxu1 %vm384_vm11, %v3612_v42  ;;  %2776 = vmatprep.subr.mxu1 %v2686_v38  ;;  %v2850_v45 = vpop.permute.xlu1 %2849 }
 0x310   : > { %v2852_v44 = vpop.permute.xlu0 %2851  ;;  %2777 = vmatpush1.msra.mxu1 %v2685_v36  ;;  %2840 = vmatprep.mubr.f32.mxu1 %v3907_v3 }
 0x311   : > { %2859 = vmatprep.subr.mxu1 %v2852_v44  ;;  %v2853_v47 = vsel %vm370_vm13, %v2850_v45, %v2852_v44  ;;  %vm3451_vm13 = vcmask 261120  }
 0x313   : > { %v2935_v49 = vpop.permute.xlu1 %2934 }
 0x314   : > { %v2937_v48 = vpop.permute.xlu0 %2936 }
 0x315   : > { %v2938_v51 = vsel %vm1335_vm0, %v2935_v49, %v2937_v48 }
 0x317   : > { %3614 = vmatmul.mubr.msk.f32.vlgmr.msra.gmra.mrb[2].mxu1 %vm384_vm11, %v2687_v46  ;;  %v3020_v53 = vpop.permute.xlu1 %3019 }
 0x318   : > { %2860 = vmatpush1.msra.mxu1 %v2853_v47  ;;  %2923 = vmatprep.mubr.f32.mxu1 %v3907_v3  ;;  %v3022_v52 = vpop.permute.xlu0 %3021 }
 0x319   : > { %2944 = vmatprep.subr.mxu1 %v2937_v48  ;;  %v3023_v55 = vsel %vm1513_vm2, %v3020_v53, %v3022_v52 }
 0x31b   : > { %v3105_v57 = vpop.permute.xlu1 %3104 }
 0x31c   : > { %v3107_v56 = vpop.permute.xlu0 %3106 }
 0x31d   : > { %v3108_v59 = vsel %vm366_vm10, %v3105_v57, %v3107_v56  ;;  %vm4593_vm10 = vmmov %vm4590_vm8 }
 0x31f   : > { %3616 = vmatmul.mubr.msk.f32.vlgmr.msra.gmra.mrb[2].mxu1 %vm384_vm11, %v3615_v50  ;;  %v3190_v61 = vpop.permute.xlu1 %3189 }
 0x320   : > { %2945 = vmatpush1.msra.mxu1 %v2938_v51  ;;  %3008 = vmatprep.mubr.f32.mxu1 %v3907_v3  ;;  %v3192_v60 = vpop.permute.xlu0 %3191 }
 0x321   : > { %3029 = vmatprep.subr.mxu1 %v3022_v52  ;;  %v3193_v0 = vsel %vm394_vm14, %v3190_v61, %v3192_v60 }
 0x323   : > { %v3275_v2 = vpop.permute.xlu1 %3274 }
 0x324   : > { %v3277_v1 = vpop.permute.xlu0 %3276 }
 0x325   : > { %v3278_v5 = vsel %vm2400_vm5, %v3275_v2, %v3277_v1 }
 0x327   : > { %3618 = vmatmul.mubr.msk.f32.vlgmr.msra.gmra.mrb[2].mxu1 %vm384_vm11, %v3617_v54  ;;  %v3360_v8 = vpop.permute.xlu1 %3359 }
 0x328   : > { %3030 = vmatpush1.msra.mxu1 %v3023_v55  ;;  %3093 = vmatprep.mubr.f32.mxu1 %v3907_v3  ;;  %v3362_v7 = vpop.permute.xlu0 %3361 }
 0x329   : > { %3114 = vmatprep.subr.mxu1 %v3107_v56  ;;  %v3363_v10 = vsel %vm4593_vm10, %v3360_v8, %v3362_v7 }
 0x32f   : > { %3620 = vmatmul.mubr.msk.f32.vlgmr.msra.gmra.mrb[2].mxu1 %vm384_vm11, %v3619_v58 }
 0x330   : > { %3115 = vmatpush1.msra.mxu1 %v3108_v59  ;;  %3178 = vmatprep.mubr.f32.mxu1 %v3907_v3 }
 0x331   : > { %3199 = vmatprep.subr.mxu1 %v3192_v60 }
 0x337   : > { %3622 = vmatmul.mubr.msk.f32.vlgmr.msra.gmra.mrb[2].mxu1 %vm384_vm11, %v3621_v63 }
 0x338   : > { %3200 = vmatpush1.msra.mxu1 %v3193_v0  ;;  %3263 = vmatprep.mubr.f32.mxu1 %v3907_v3  ;;  %v3446_v12 = vpop.permute.xlu1 %3445 }
 0x339   : > { %3284 = vmatprep.subr.mxu1 %v3277_v1 }
 0x33f   : > { %3624 = vmatmul.mubr.msk.f32.vlgmr.msra.gmra.mrb[2].mxu1 %vm384_vm11, %v3623_v4 }
 0x340   : > { %3285 = vmatpush1.msra.mxu1 %v3278_v5  ;;  %3348 = vmatprep.mubr.f32.mxu1 %v3907_v3 }
 0x341   : > { %3369 = vmatprep.subr.mxu1 %v3362_v7 }
 0x347   : > { %3626 = vmatmul.mubr.msk.f32.vlgmr.msra.gmra.mrb[2].mxu1 %vm384_vm11, %v3625_v9 }
 0x348   : > { %3370 = vmatpush1.msra.mxu1 %v3363_v10  ;;  %3433 = vmatprep.mubr.f32.mxu1 %v3907_v3 }
 0x34f   : > { %3628 = vmatmul.mubr.msk.f32.vlgmr.msra.gmra.mrb[2].mxu1 %vm384_vm11, %v3627_v11 }
 0x422   : > { %v3435_v13 = vpop.f32.mrb[2].mxu1 }
 0x423   : > { %v3448_v14 = vadd.f32 %v3446_v12, %v3435_v13  ;;  %v3437_v15 = vpop.f32.mrb[3].mxu1 }
 0x424   : > { %v3449_v3 = vadd.f32 %v3446_v12, %v3437_v15 }
 0x425   : > { %3450 = vst [vmem:[%s295_s22] sm:$0xff] %v3448_v14 }
 0x426   : > { %3452 = vst.msk [vmem:[%s295_s22 + $0x8] sm:$0xff] %vm3451_vm13, %v3449_v3 }
 0x427   : > { %3823 = shalt.err (!%p3820_p10)
}
 0x428   : > { %s3824_s0 = scalar_lea.hbm %s4493_s23, 256  ;;  %s3828_s16 = scalar_lea.hbm %s4553_s7, 1024 }
 0x429   : > { %p3825_p11 = scmp.ne.s32.totalorder %s4493_s23, %s3824_s0  ;;  %p3829_p0 = scmp.lt.u32.totalorder %s4493_s23, %s4553_s7 }
 0x42a   : > { %p3830_p1 = scmp.lt.u32.totalorder %s3828_s16, %s3824_s0  ;;  %p3832_p4 = scmp.lt.u32.totalorder %s3824_s0, %s4493_s23 }
 0x42b   : > { %p3826_p12 = pnand %p3825_p11, %p4034_p3 }
 0x42c   : > { %p3831_p2 = por %p3830_p1, %p3829_p0 }
 0x42d   : > { %p3827_p13 = pneg %p3826_p12 }
 0x42e   : > { %p3833_p5 = por %p3832_p4, %p3831_p2 }
 0x430   : > { %p3834_p6 = pnand %p3833_p5, %p3827_p13 }
 0x432   : > { %3837 = shalt.err (!%p3834_p6)
}
 0x433   : > { %3701 = dma.vmem_to_hbm [thread:$0]  (%p4034_p3), %s4495_s17, 256, %s4493_s23, %s3454_s27  }
 0x434 PF: > { %p3707_p7 = scmp.ge.s32.totalorder %s3904_s8, 2  ;;  %s3482_s28 = sand.u32 1, %s3876_s24  }
 0x435   : > { %s3483_s21 = scalar_lea.sflag [#allocation3], %s3482_s28 }
 0x436   : > { %p3704_p9 = pnand %p3707_p7, %p4043_p8 }
 0x438   : > { %3871 = dma.done.wait (!%p3704_p9), %s3483_s21, 256  }
 0x439   : > { %3873 = vsyncadd (!%p3704_p9), %s3483_s21, 4294967040  ;;  %s20_s8 = sadd.s32 1, %s3904_s8   ;;  %s4594_s24 = smov %s3880_s25 }
 0x43a   : > { %p17_p10 = scmp.ge.s32.totalorder %s20_s8, 6   ;;  %s4595_s25 = smov %s3884_s26 }
 0x43b   : > { %s4596_s26 = smov %s4052_s19  ;;  %s4597_s27 = smov %s3896_s29 }
 0x43c   : > { %s4598_s28 = smov %s3900_s30  ;;  %s4599_s29 = smov %s4602_s11 }
 0x43d   : > { %s4600_s30 = smov %s4606_s12  ;;  %19 = sbr.rel (!%p17_p10) target bundleno = 7 (0x7), region = 115 }
 0x444   :  { %3488 = vsyncpa [#allocation3], 1 }
 0x445   :  { %3490 = vsyncpa [#allocation3 + $0x1], 1 }

</bundles_post_ra>
